<compile_context>
chip_gen: v5e
topology: v5e:2x2
jax: 0.10.0
libtpu: 0.0.40
codegen_flags: <defaults>
</compile_context>

<pallas_src>
import math

import jax
import jax.numpy as jnp
from jax.experimental import pallas as pl
from jax.experimental.pallas import tpu as pltpu


def _round_up(x, m):
    return ((x + m - 1) // m) * m


def _layernorm(x, gamma, beta, eps=1e-5):
    mu = jnp.mean(x, axis=-1, keepdims=True)
    var = jnp.mean((x - mu) ** 2, axis=-1, keepdims=True)
    return (x - mu) * jax.lax.rsqrt(var + eps) * gamma + beta


def make_positional_encoding(d_model, max_len=21):
    position = jnp.arange(max_len, dtype=jnp.float32)[:, None]
    div_term = jnp.exp(jnp.arange(0, d_model, 2, dtype=jnp.float32)
                       * (-math.log(10000.0) / d_model))
    pe = jnp.zeros((max_len, d_model), dtype=jnp.float32)
    pe = pe.at[:, 0::2].set(jnp.sin(position * div_term))
    ncos = pe[:, 1::2].shape[1]
    pe = pe.at[:, 1::2].set(jnp.cos(position * div_term[:ncos]))
    return pe


class _Packer:
    """Packs 2-D parameter tensors into one contiguous (rows, width) slab.

    Each tensor occupies consecutive rows, left-justified on the lane axis and
    zero-padded to `width`.  `add` returns static (row_offset, rows, cols)
    metadata used for zero-cost static ref slicing inside the kernel.
    """

    def __init__(self, width, dtype):
        self.width, self.dtype = width, dtype
        self._blocks, self._rows = [], 0

    def add(self, arr):
        arr = jnp.asarray(arr, self.dtype)
        r, c = arr.shape
        assert c <= self.width
        if c < self.width:
            arr = jnp.pad(arr, ((0, 0), (0, self.width - c)))
        off = self._rows
        self._blocks.append(arr)
        self._rows += r
        return (off, r, c)

    def finalize(self):
        slab = jnp.concatenate(self._blocks, axis=0)
        pad = (-slab.shape[0]) % 8
        if pad:
            slab = jnp.pad(slab, ((0, pad), (0, 0)))
        return slab


def build_model(key, *, input_size, nhead, lstm_input_size, num_layers,
                lstm_hidden_size, lstm_hidden_size2, lstm_hidden_size3,
                layer_dim, output_dim, dim_feedforward=2048, max_len=21,
                tm_max=512):
    """Returns (forward_fn, weights); weights = dict of 3 packed slabs."""
    d = input_size
    assert lstm_input_size == input_size  # required by the torch forward wiring
    del nhead  # head count is irrelevant at seq_len == 1 (softmax over one key)

    keys = iter(jax.random.split(key, 4096))

    def rnd(shape, scale=0.05):
        return scale * jax.random.normal(next(keys), shape, dtype=jnp.float32)

    hiddens = (lstm_hidden_size, lstm_hidden_size2, lstm_hidden_size3)
    gpads = tuple(_round_up(2 * h, 128) for h in hiddens)   # lane-aligned gate groups
    ypad = _round_up(output_dim, 128)                        # lane-dense fc output
    narrow_w = max(d, 128, max(3 * g for g in gpads))

    nf = _Packer(narrow_w, jnp.float32)           # attn fold / LN / biases / LSTM / fc
    wf = _Packer(dim_feedforward, jnp.float32)    # folded FF bias b1 (wide rows)
    bfw = _Packer(dim_feedforward, jnp.bfloat16)  # FF matmul weights (MXU operands)

    meta = {}
    meta["pe_row"] = nf.add(make_positional_encoding(d, max_len)[:1])

    xf_layers = []
    for _ in range(num_layers):
        w_in, b_in = rnd((d, 3 * d)), rnd((1, 3 * d))     # in_proj (pre-transposed)
        w_out, b_out = rnd((d, d)), rnd((1, d))           # out_proj (pre-transposed)
        w_v, b_v = w_in[:, 2 * d:], b_in[:, 2 * d:]       # only V used at seq_len == 1
        g1 = jnp.ones((1, d), jnp.float32); be1 = jnp.zeros((1, d), jnp.float32)
        g2 = jnp.ones((1, d), jnp.float32); be2 = jnp.zeros((1, d), jnp.float32)
        w1, b1 = rnd((d, dim_feedforward)), rnd((1, dim_feedforward))
        w2, b2 = rnd((dim_feedforward, d)), rnd((1, d))
        xf_layers.append(dict(
            # seq_len == 1 fold: attn = x @ (W_v W_out) + (b_v W_out + b_out)
            w_vo=nf.add(w_v @ w_out),
            b_vo=nf.add(b_v @ w_out + b_out),
            # LN1 affine folded into the first FF matmul; kept for the residual.
            w1=bfw.add(g1.reshape(-1, 1) * w1),
            b1=wf.add(be1 @ w1 + b1),
            w2t=bfw.add(w2.T),            # stored transposed: long (K=2048) axis last
            b2=nf.add(b2),
            g1=nf.add(g1), be1=nf.add(be1), g2=nf.add(g2), be2=nf.add(be2),
        ))
    meta["xf_layers"] = xf_layers

    # Bidirectional LSTM stacks, seq_len == 1, h0 == c0 == 0:
    #   * only the input projection contributes (bias = b_ih + b_hh),
    #   * the forget gate multiplies c0 == 0 -> its columns are dropped,
    #   * fwd/bwd directions merged into one matmul; gate groups [i | o | g],
    #     each zero-padded to a 128-lane boundary so gate products are
    #     lane-aligned and each layer's output is a lane-dense padded slab.
    lstm_layers = []
    in_width, in_rows = d, d
    for hidden, gpad in zip(hiddens, gpads):
        for _ in range(layer_dim):
            def one_dir():
                w_ih = rnd((in_width, 4 * hidden))                 # gate order i,f,g,o
                b = rnd((1, 4 * hidden)) + rnd((1, 4 * hidden))    # b_ih + b_hh
                sl = lambda a, k: a[:, k * hidden:(k + 1) * hidden]
                return (sl(w_ih, 0), sl(w_ih, 2), sl(w_ih, 3),
                        sl(b, 0), sl(b, 2), sl(b, 3))
            i_f, g_f, o_f, bi_f, bg_f, bo_f = one_dir()
            i_b, g_b, o_b, bi_b, bg_b, bo_b = one_dir()
            w = jnp.zeros((in_rows, 3 * gpad), jnp.float32)
            b = jnp.zeros((1, 3 * gpad), jnp.float32)
            groups = ((i_f, i_b, bi_f, bi_b),     # input gate
                      (o_f, o_b, bo_f, bo_b),     # output gate
                      (g_f, g_b, bg_f, bg_b))     # cell gate
            for k, (fwd_w, bwd_w, fwd_b, bwd_b) in enumerate(groups):
                w = w.at[:in_width, k * gpad:k * gpad + hidden].set(fwd_w)
                w = w.at[:in_width, k * gpad + hidden:k * gpad + 2 * hidden].set(bwd_w)
                b = b.at[:, k * gpad:k * gpad + hidden].set(fwd_b)
                b = b.at[:, k * gpad + hidden:k * gpad + 2 * hidden].set(bwd_b)
            lstm_layers.append(dict(w=nf.add(w), b=nf.add(b), gpad=gpad))
            in_width, in_rows = 2 * hidden, gpad
    meta["lstm_layers"] = lstm_layers

    # fc head padded to 128 output lanes -> lane-dense store; sliced in wrapper.
    fc_w, fc_b = rnd((2 * lstm_hidden_size3, output_dim)), rnd((1, output_dim))
    fc_w_pad = jnp.zeros((gpads[-1], ypad), jnp.float32)
    fc_w_pad = fc_w_pad.at[:2 * lstm_hidden_size3, :output_dim].set(fc_w)
    fc_b_pad = jnp.zeros((1, ypad), jnp.float32).at[:, :output_dim].set(fc_b)
    meta["fc_w"] = nf.add(fc_w_pad)
    meta["fc_b"] = nf.add(fc_b_pad)

    weights = dict(nf32=nf.finalize(), wf32=wf.finalize(), bf16=bfw.finalize())

    out_w = gpads[-1] + ypad
    h3 = lstm_hidden_size3

    def forward(weights, x):
        n, dx = x.shape
        assert dx == d
        n_pad = max(8, _round_up(n, 8))
        tm = min(tm_max, n_pad)           # v7x-safe; raise tm_max on v6e/v5e
        n_pad = _round_up(n_pad, tm)
        if n_pad != n:
            x = jnp.pad(x, ((0, n_pad - n), (0, 0)))

        def kernel(x_ref, nf_ref, wf_ref, bf_ref, o_ref):
            def NF(s):
                off, r, c = s
                return nf_ref[off:off + r, 0:c]

            def WF(s):
                off, r, c = s
                return wf_ref[off:off + r, 0:c]

            def BF(s):
                off, r, c = s
                return bf_ref[off:off + r, 0:c]

            # PositionalEncoding: x.unsqueeze(0).size(0) == 1 -> only pe[0] added.
            h = x_ref[...] + NF(meta["pe_row"])

            for lm in meta["xf_layers"]:
                attn = jnp.dot(h, NF(lm["w_vo"]),
                               preferred_element_type=jnp.float32) + NF(lm["b_vo"])
                s = h + attn
                mu = jnp.mean(s, axis=-1, keepdims=True)
                var = jnp.mean((s - mu) ** 2, axis=-1, keepdims=True)
                s_n = (s - mu) * jax.lax.rsqrt(var + 1e-5)   # LN1 (affine folded in FF)
                ff = jnp.dot(s_n.astype(jnp.bfloat16), BF(lm["w1"]),
                             preferred_element_type=jnp.float32) + WF(lm["b1"])
                ff = jnp.maximum(ff, 0.0)                    # ReLU (layer default)
                ff2 = jax.lax.dot_general(                   # ff @ w2 with w2 stored transposed
                    ff.astype(jnp.bfloat16), BF(lm["w2t"]),
                    dimension_numbers=(((1,), (1,)), ((), ())),
                    preferred_element_type=jnp.float32) + NF(lm["b2"])
                y = s_n * NF(lm["g1"]) + NF(lm["be1"])       # LN1 affine, residual path
                h = _layernorm(y + ff2, NF(lm["g2"]), NF(lm["be2"]))

            # permute(1,0,2) -> (B=N, T=1, D); the length-1 time axis stays implicit.
            # TODO(synk): nn.Dropout(p=0.5) between LSTM stacks is train-mode only;
            # eval-mode identity is implemented here.
            out = h
            for lm in meta["lstm_layers"]:
                gp = lm["gpad"]
                gates = jnp.dot(out, NF(lm["w"]),
                                preferred_element_type=jnp.float32) + NF(lm["b"])
                sig = jax.nn.sigmoid(gates[:, :2 * gp])      # [i | o], both directions
                g = jnp.tanh(gates[:, 2 * gp:])              # g, both directions
                c = sig[:, :gp] * g                          # c1 = i*g   (c0 == 0)
                out = sig[:, gp:] * jnp.tanh(c)              # h1 = o*tanh(c1); lanes>=2H stay 0

            y_out = jnp.dot(out, NF(meta["fc_w"]),
                            preferred_element_type=jnp.float32) + NF(meta["fc_b"])
            o_ref[:, 0:gpads[-1]] = out                      # lstm3 output, lane-dense
            o_ref[:, gpads[-1]:out_w] = y_out                # fc head, lane-dense

        grid = (n_pad // tm,)
        res = pl.pallas_call(
            kernel,
            out_shape=jax.ShapeDtypeStruct((n_pad, out_w), jnp.float32),
            grid=grid,
            in_specs=[
                pl.BlockSpec((tm, d), lambda i: (i, 0)),
                pl.BlockSpec(weights["nf32"].shape, lambda i: (0, 0)),
                pl.BlockSpec(weights["wf32"].shape, lambda i: (0, 0)),
                pl.BlockSpec(weights["bf16"].shape, lambda i: (0, 0)),
            ],
            out_specs=pl.BlockSpec((tm, out_w), lambda i: (i, 0)),
            compiler_params=pltpu.CompilerParams(
                dimension_semantics=("parallel",)),
        )(x, weights["nf32"], weights["wf32"], weights["bf16"])

        y = res[:n, gpads[-1]:gpads[-1] + output_dim]        # (N, output_dim)
        lstm3 = res[:n, :2 * h3]                             # (N, 2*H3)
        # Torch returns (fc(out_lstm3).squeeze(1), out_lstm3 with shape (N, 1, 2*H3)).
        return y, lstm3[:, None, :]

    return forward, weights


if __name__ == "__main__":
    key = jax.random.PRNGKey(0)
    pkey, xkey = jax.random.split(key)

    N, D = 8, 16            # tokens, input_size
    H1, H2, H3 = 32, 32, 16
    OUT_DIM = 1

    forward, weights = build_model(
        pkey,
        input_size=D, nhead=4, lstm_input_size=D, num_layers=2,
        lstm_hidden_size=H1, lstm_hidden_size2=H2, lstm_hidden_size3=H3,
        layer_dim=1, output_dim=OUT_DIM,
    )
    x = jax.random.normal(xkey, (N, D), dtype=jnp.float32)

    fwd = jax.jit(forward)
    y, out_lstm3 = fwd(weights, x)
    jax.block_until_ready((y, out_lstm3))

    assert y.shape == (N, OUT_DIM)
    assert out_lstm3.shape == (N, 1, 2 * H3)
    assert bool(jnp.all(jnp.isfinite(y))) and bool(jnp.all(jnp.isfinite(out_lstm3)))
    print("KERNEL_OK")
</pallas_src>

<mosaic_0001>
module attributes {stable_mosaic.version = 11 : i64} {
  func.func @kernel(%arg0: i32, %arg1: memref<8x16xf32, #tpu.memory_space<vmem>>, %arg2: memref<456x384xf32, #tpu.memory_space<vmem>>, %arg3: memref<8x2048xf32, #tpu.memory_space<vmem>>, %arg4: memref<64x2048xbf16, #tpu.memory_space<vmem>>, %arg5: memref<8x256xf32, #tpu.memory_space<vmem>>) attributes {dimension_semantics = [#tpu.dimension_semantics<parallel>], iteration_bounds = array<i64: 1>, scalar_prefetch = 0 : i64, scratch_operands = 0 : i64, tpu.core_type = #tpu.core_type<tc>, window_params = [{transform_indices = @transform_0, window_bounds = array<i64: 8, 16>}, {pipeline_mode = #tpu.pipeline_mode<synchronous>, transform_indices = @transform_1, window_bounds = array<i64: 456, 384>}, {pipeline_mode = #tpu.pipeline_mode<synchronous>, transform_indices = @transform_2, window_bounds = array<i64: 8, 2048>}, {pipeline_mode = #tpu.pipeline_mode<synchronous>, transform_indices = @transform_3, window_bounds = array<i64: 64, 2048>}, {transform_indices = @transform_4, window_bounds = array<i64: 8, 256>}]} {
    %c0 = arith.constant 0 : index
    %c0_0 = arith.constant 0 : index
    %0 = vector.load %arg1[%c0, %c0_0] : memref<8x16xf32, #tpu.memory_space<vmem>>, vector<8x16xf32>
    %c0_1 = arith.constant 0 : index
    %c0_2 = arith.constant 0 : index
    %1 = vector.load %arg2[%c0_1, %c0_2] : memref<456x384xf32, #tpu.memory_space<vmem>>, vector<1x16xf32>
    %2 = vector.broadcast %1 : vector<1x16xf32> to vector<8x16xf32>
    %3 = arith.addf %0, %2 : vector<8x16xf32>
    %c1 = arith.constant 1 : index
    %c0_3 = arith.constant 0 : index
    %4 = vector.load %arg2[%c1, %c0_3] : memref<456x384xf32, #tpu.memory_space<vmem>>, vector<16x16xf32>
    %cst = arith.constant dense<0.000000e+00> : vector<8x16xf32>
    %5 = tpu.matmul %3, %4, %cst {dimension_numbers = #tpu.dot_dimension_numbers<[1], [0], [0], [1], [0, 0, 1, 1], [], []>} : vector<8x16xf32>, vector<16x16xf32>, vector<8x16xf32> -> vector<8x16xf32>
    %c17 = arith.constant 17 : index
    %c0_4 = arith.constant 0 : index
    %6 = vector.load %arg2[%c17, %c0_4] : memref<456x384xf32, #tpu.memory_space<vmem>>, vector<1x16xf32>
    %7 = vector.broadcast %6 : vector<1x16xf32> to vector<8x16xf32>
    %8 = arith.addf %5, %7 : vector<8x16xf32>
    %9 = arith.addf %3, %8 : vector<8x16xf32>
    %cst_5 = arith.constant dense<0.000000e+00> : vector<8xf32>
    %10 = vector.multi_reduction <add>, %9, %cst_5 [1] : vector<8x16xf32> to vector<8xf32>
    %11 = vector.shape_cast %10 : vector<8xf32> to vector<8x1xf32>
    %cst_6 = arith.constant 1.600000e+01 : f32
    %12 = vector.broadcast %cst_6 : f32 to vector<8x1xf32>
    %13 = arith.divf %11, %12 : vector<8x1xf32>
    %14 = vector.broadcast %13 : vector<8x1xf32> to vector<8x16xf32>
    %15 = arith.subf %9, %14 : vector<8x16xf32>
    %16 = arith.mulf %15, %15 : vector<8x16xf32>
    %cst_7 = arith.constant dense<0.000000e+00> : vector<8xf32>
    %17 = vector.multi_reduction <add>, %16, %cst_7 [1] : vector<8x16xf32> to vector<8xf32>
    %18 = vector.shape_cast %17 : vector<8xf32> to vector<8x1xf32>
    %cst_8 = arith.constant 1.600000e+01 : f32
    %19 = vector.broadcast %cst_8 : f32 to vector<8x1xf32>
    %20 = arith.divf %18, %19 : vector<8x1xf32>
    %21 = vector.broadcast %13 : vector<8x1xf32> to vector<8x16xf32>
    %22 = arith.subf %9, %21 : vector<8x16xf32>
    %cst_9 = arith.constant 9.99999974E-6 : f32
    %23 = vector.broadcast %cst_9 : f32 to vector<8x1xf32>
    %24 = arith.addf %20, %23 : vector<8x1xf32>
    %25 = math.rsqrt %24 : vector<8x1xf32>
    %26 = vector.broadcast %25 : vector<8x1xf32> to vector<8x16xf32>
    %27 = arith.mulf %22, %26 : vector<8x16xf32>
    %28 = arith.truncf %27 : vector<8x16xf32> to vector<8x16xbf16>
    %c0_10 = arith.constant 0 : index
    %c0_11 = arith.constant 0 : index
    %29 = vector.load %arg4[%c0_10, %c0_11] : memref<64x2048xbf16, #tpu.memory_space<vmem>>, vector<16x2048xbf16>
    %cst_12 = arith.constant dense<0.000000e+00> : vector<8x2048xf32>
    %30 = tpu.matmul %28, %29, %cst_12 {dimension_numbers = #tpu.dot_dimension_numbers<[1], [0], [0], [1], [0, 0, 1, 1], [], []>} : vector<8x16xbf16>, vector<16x2048xbf16>, vector<8x2048xf32> -> vector<8x2048xf32>
    %c0_13 = arith.constant 0 : index
    %c0_14 = arith.constant 0 : index
    %31 = vector.load %arg3[%c0_13, %c0_14] : memref<8x2048xf32, #tpu.memory_space<vmem>>, vector<1x2048xf32>
    %32 = vector.broadcast %31 : vector<1x2048xf32> to vector<8x2048xf32>
    %33 = arith.addf %30, %32 : vector<8x2048xf32>
    %cst_15 = arith.constant 0.000000e+00 : f32
    %34 = vector.broadcast %cst_15 : f32 to vector<8x2048xf32>
    %35 = arith.maximumf %33, %34 : vector<8x2048xf32>
    %36 = arith.truncf %35 : vector<8x2048xf32> to vector<8x2048xbf16>
    %c16 = arith.constant 16 : index
    %c0_16 = arith.constant 0 : index
    %37 = vector.load %arg4[%c16, %c0_16] : memref<64x2048xbf16, #tpu.memory_space<vmem>>, vector<16x2048xbf16>
    %cst_17 = arith.constant dense<0.000000e+00> : vector<8x16xf32>
    %38 = tpu.matmul %36, %37, %cst_17 {dimension_numbers = #tpu.dot_dimension_numbers<[1], [1], [0], [0], [0, 0, 1, 0], [], []>} : vector<8x2048xbf16>, vector<16x2048xbf16>, vector<8x16xf32> -> vector<8x16xf32>
    %c18 = arith.constant 18 : index
    %c0_18 = arith.constant 0 : index
    %39 = vector.load %arg2[%c18, %c0_18] : memref<456x384xf32, #tpu.memory_space<vmem>>, vector<1x16xf32>
    %40 = vector.broadcast %39 : vector<1x16xf32> to vector<8x16xf32>
    %41 = arith.addf %38, %40 : vector<8x16xf32>
    %c19 = arith.constant 19 : index
    %c0_19 = arith.constant 0 : index
    %42 = vector.load %arg2[%c19, %c0_19] : memref<456x384xf32, #tpu.memory_space<vmem>>, vector<1x16xf32>
    %43 = vector.broadcast %42 : vector<1x16xf32> to vector<8x16xf32>
    %44 = arith.mulf %27, %43 : vector<8x16xf32>
    %c20 = arith.constant 20 : index
    %c0_20 = arith.constant 0 : index
    %45 = vector.load %arg2[%c20, %c0_20] : memref<456x384xf32, #tpu.memory_space<vmem>>, vector<1x16xf32>
    %46 = vector.broadcast %45 : vector<1x16xf32> to vector<8x16xf32>
    %47 = arith.addf %44, %46 : vector<8x16xf32>
    %48 = arith.addf %47, %41 : vector<8x16xf32>
    %c21 = arith.constant 21 : index
    %c0_21 = arith.constant 0 : index
    %49 = vector.load %arg2[%c21, %c0_21] : memref<456x384xf32, #tpu.memory_space<vmem>>, vector<1x16xf32>
    %c22 = arith.constant 22 : index
    %c0_22 = arith.constant 0 : index
    %50 = vector.load %arg2[%c22, %c0_22] : memref<456x384xf32, #tpu.memory_space<vmem>>, vector<1x16xf32>
    %cst_23 = arith.constant dense<0.000000e+00> : vector<8xf32>
    %51 = vector.multi_reduction <add>, %48, %cst_23 [1] : vector<8x16xf32> to vector<8xf32>
    %52 = vector.shape_cast %51 : vector<8xf32> to vector<8x1xf32>
    %cst_24 = arith.constant 1.600000e+01 : f32
    %53 = vector.broadcast %cst_24 : f32 to vector<8x1xf32>
    %54 = arith.divf %52, %53 : vector<8x1xf32>
    %55 = vector.broadcast %54 : vector<8x1xf32> to vector<8x16xf32>
    %56 = arith.subf %48, %55 : vector<8x16xf32>
    %57 = arith.mulf %56, %56 : vector<8x16xf32>
    %cst_25 = arith.constant dense<0.000000e+00> : vector<8xf32>
    %58 = vector.multi_reduction <add>, %57, %cst_25 [1] : vector<8x16xf32> to vector<8xf32>
    %59 = vector.shape_cast %58 : vector<8xf32> to vector<8x1xf32>
    %cst_26 = arith.constant 1.600000e+01 : f32
    %60 = vector.broadcast %cst_26 : f32 to vector<8x1xf32>
    %61 = arith.divf %59, %60 : vector<8x1xf32>
    %62 = vector.broadcast %54 : vector<8x1xf32> to vector<8x16xf32>
    %63 = arith.subf %48, %62 : vector<8x16xf32>
    %cst_27 = arith.constant 9.99999974E-6 : f32
    %64 = vector.broadcast %cst_27 : f32 to vector<8x1xf32>
    %65 = arith.addf %61, %64 : vector<8x1xf32>
    %66 = math.rsqrt %65 : vector<8x1xf32>
    %67 = vector.broadcast %66 : vector<8x1xf32> to vector<8x16xf32>
    %68 = arith.mulf %63, %67 : vector<8x16xf32>
    %69 = vector.broadcast %49 : vector<1x16xf32> to vector<8x16xf32>
    %70 = arith.mulf %68, %69 : vector<8x16xf32>
    %71 = vector.broadcast %50 : vector<1x16xf32> to vector<8x16xf32>
    %72 = arith.addf %70, %71 : vector<8x16xf32>
    %c23 = arith.constant 23 : index
    %c0_28 = arith.constant 0 : index
    %73 = vector.load %arg2[%c23, %c0_28] : memref<456x384xf32, #tpu.memory_space<vmem>>, vector<16x16xf32>
    %cst_29 = arith.constant dense<0.000000e+00> : vector<8x16xf32>
    %74 = tpu.matmul %72, %73, %cst_29 {dimension_numbers = #tpu.dot_dimension_numbers<[1], [0], [0], [1], [0, 0, 1, 1], [], []>} : vector<8x16xf32>, vector<16x16xf32>, vector<8x16xf32> -> vector<8x16xf32>
    %c39 = arith.constant 39 : index
    %c0_30 = arith.constant 0 : index
    %75 = vector.load %arg2[%c39, %c0_30] : memref<456x384xf32, #tpu.memory_space<vmem>>, vector<1x16xf32>
    %76 = vector.broadcast %75 : vector<1x16xf32> to vector<8x16xf32>
    %77 = arith.addf %74, %76 : vector<8x16xf32>
    %78 = arith.addf %72, %77 : vector<8x16xf32>
    %cst_31 = arith.constant dense<0.000000e+00> : vector<8xf32>
    %79 = vector.multi_reduction <add>, %78, %cst_31 [1] : vector<8x16xf32> to vector<8xf32>
    %80 = vector.shape_cast %79 : vector<8xf32> to vector<8x1xf32>
    %cst_32 = arith.constant 1.600000e+01 : f32
    %81 = vector.broadcast %cst_32 : f32 to vector<8x1xf32>
    %82 = arith.divf %80, %81 : vector<8x1xf32>
    %83 = vector.broadcast %82 : vector<8x1xf32> to vector<8x16xf32>
    %84 = arith.subf %78, %83 : vector<8x16xf32>
    %85 = arith.mulf %84, %84 : vector<8x16xf32>
    %cst_33 = arith.constant dense<0.000000e+00> : vector<8xf32>
    %86 = vector.multi_reduction <add>, %85, %cst_33 [1] : vector<8x16xf32> to vector<8xf32>
    %87 = vector.shape_cast %86 : vector<8xf32> to vector<8x1xf32>
    %cst_34 = arith.constant 1.600000e+01 : f32
    %88 = vector.broadcast %cst_34 : f32 to vector<8x1xf32>
    %89 = arith.divf %87, %88 : vector<8x1xf32>
    %90 = vector.broadcast %82 : vector<8x1xf32> to vector<8x16xf32>
    %91 = arith.subf %78, %90 : vector<8x16xf32>
    %cst_35 = arith.constant 9.99999974E-6 : f32
    %92 = vector.broadcast %cst_35 : f32 to vector<8x1xf32>
    %93 = arith.addf %89, %92 : vector<8x1xf32>
    %94 = math.rsqrt %93 : vector<8x1xf32>
    %95 = vector.broadcast %94 : vector<8x1xf32> to vector<8x16xf32>
    %96 = arith.mulf %91, %95 : vector<8x16xf32>
    %97 = arith.truncf %96 : vector<8x16xf32> to vector<8x16xbf16>
    %c32 = arith.constant 32 : index
    %c0_36 = arith.constant 0 : index
    %98 = vector.load %arg4[%c32, %c0_36] : memref<64x2048xbf16, #tpu.memory_space<vmem>>, vector<16x2048xbf16>
    %cst_37 = arith.constant dense<0.000000e+00> : vector<8x2048xf32>
    %99 = tpu.matmul %97, %98, %cst_37 {dimension_numbers = #tpu.dot_dimension_numbers<[1], [0], [0], [1], [0, 0, 1, 1], [], []>} : vector<8x16xbf16>, vector<16x2048xbf16>, vector<8x2048xf32> -> vector<8x2048xf32>
    %c1_38 = arith.constant 1 : index
    %c0_39 = arith.constant 0 : index
    %100 = vector.load %arg3[%c1_38, %c0_39] : memref<8x2048xf32, #tpu.memory_space<vmem>>, vector<1x2048xf32>
    %101 = vector.broadcast %100 : vector<1x2048xf32> to vector<8x2048xf32>
    %102 = arith.addf %99, %101 : vector<8x2048xf32>
    %cst_40 = arith.constant 0.000000e+00 : f32
    %103 = vector.broadcast %cst_40 : f32 to vector<8x2048xf32>
    %104 = arith.maximumf %102, %103 : vector<8x2048xf32>
    %105 = arith.truncf %104 : vector<8x2048xf32> to vector<8x2048xbf16>
    %c48 = arith.constant 48 : index
    %c0_41 = arith.constant 0 : index
    %106 = vector.load %arg4[%c48, %c0_41] : memref<64x2048xbf16, #tpu.memory_space<vmem>>, vector<16x2048xbf16>
    %cst_42 = arith.constant dense<0.000000e+00> : vector<8x16xf32>
    %107 = tpu.matmul %105, %106, %cst_42 {dimension_numbers = #tpu.dot_dimension_numbers<[1], [1], [0], [0], [0, 0, 1, 0], [], []>} : vector<8x2048xbf16>, vector<16x2048xbf16>, vector<8x16xf32> -> vector<8x16xf32>
    %c40 = arith.constant 40 : index
    %c0_43 = arith.constant 0 : index
    %108 = vector.load %arg2[%c40, %c0_43] : memref<456x384xf32, #tpu.memory_space<vmem>>, vector<1x16xf32>
    %109 = vector.broadcast %108 : vector<1x16xf32> to vector<8x16xf32>
    %110 = arith.addf %107, %109 : vector<8x16xf32>
    %c41 = arith.constant 41 : index
    %c0_44 = arith.constant 0 : index
    %111 = vector.load %arg2[%c41, %c0_44] : memref<456x384xf32, #tpu.memory_space<vmem>>, vector<1x16xf32>
    %112 = vector.broadcast %111 : vector<1x16xf32> to vector<8x16xf32>
    %113 = arith.mulf %96, %112 : vector<8x16xf32>
    %c42 = arith.constant 42 : index
    %c0_45 = arith.constant 0 : index
    %114 = vector.load %arg2[%c42, %c0_45] : memref<456x384xf32, #tpu.memory_space<vmem>>, vector<1x16xf32>
    %115 = vector.broadcast %114 : vector<1x16xf32> to vector<8x16xf32>
    %116 = arith.addf %113, %115 : vector<8x16xf32>
    %117 = arith.addf %116, %110 : vector<8x16xf32>
    %c43 = arith.constant 43 : index
    %c0_46 = arith.constant 0 : index
    %118 = vector.load %arg2[%c43, %c0_46] : memref<456x384xf32, #tpu.memory_space<vmem>>, vector<1x16xf32>
    %c44 = arith.constant 44 : index
    %c0_47 = arith.constant 0 : index
    %119 = vector.load %arg2[%c44, %c0_47] : memref<456x384xf32, #tpu.memory_space<vmem>>, vector<1x16xf32>
    %cst_48 = arith.constant dense<0.000000e+00> : vector<8xf32>
    %120 = vector.multi_reduction <add>, %117, %cst_48 [1] : vector<8x16xf32> to vector<8xf32>
    %121 = vector.shape_cast %120 : vector<8xf32> to vector<8x1xf32>
    %cst_49 = arith.constant 1.600000e+01 : f32
    %122 = vector.broadcast %cst_49 : f32 to vector<8x1xf32>
    %123 = arith.divf %121, %122 : vector<8x1xf32>
    %124 = vector.broadcast %123 : vector<8x1xf32> to vector<8x16xf32>
    %125 = arith.subf %117, %124 : vector<8x16xf32>
    %126 = arith.mulf %125, %125 : vector<8x16xf32>
    %cst_50 = arith.constant dense<0.000000e+00> : vector<8xf32>
    %127 = vector.multi_reduction <add>, %126, %cst_50 [1] : vector<8x16xf32> to vector<8xf32>
    %128 = vector.shape_cast %127 : vector<8xf32> to vector<8x1xf32>
    %cst_51 = arith.constant 1.600000e+01 : f32
    %129 = vector.broadcast %cst_51 : f32 to vector<8x1xf32>
    %130 = arith.divf %128, %129 : vector<8x1xf32>
    %131 = vector.broadcast %123 : vector<8x1xf32> to vector<8x16xf32>
    %132 = arith.subf %117, %131 : vector<8x16xf32>
    %cst_52 = arith.constant 9.99999974E-6 : f32
    %133 = vector.broadcast %cst_52 : f32 to vector<8x1xf32>
    %134 = arith.addf %130, %133 : vector<8x1xf32>
    %135 = math.rsqrt %134 : vector<8x1xf32>
    %136 = vector.broadcast %135 : vector<8x1xf32> to vector<8x16xf32>
    %137 = arith.mulf %132, %136 : vector<8x16xf32>
    %138 = vector.broadcast %118 : vector<1x16xf32> to vector<8x16xf32>
    %139 = arith.mulf %137, %138 : vector<8x16xf32>
    %140 = vector.broadcast %119 : vector<1x16xf32> to vector<8x16xf32>
    %141 = arith.addf %139, %140 : vector<8x16xf32>
    %c45 = arith.constant 45 : index
    %c0_53 = arith.constant 0 : index
    %142 = vector.load %arg2[%c45, %c0_53] : memref<456x384xf32, #tpu.memory_space<vmem>>, vector<16x384xf32>
    %cst_54 = arith.constant dense<0.000000e+00> : vector<8x384xf32>
    %143 = tpu.matmul %141, %142, %cst_54 {dimension_numbers = #tpu.dot_dimension_numbers<[1], [0], [0], [1], [0, 0, 1, 1], [], []>} : vector<8x16xf32>, vector<16x384xf32>, vector<8x384xf32> -> vector<8x384xf32>
    %c61 = arith.constant 61 : index
    %c0_55 = arith.constant 0 : index
    %144 = vector.load %arg2[%c61, %c0_55] : memref<456x384xf32, #tpu.memory_space<vmem>>, vector<1x384xf32>
    %145 = vector.broadcast %144 : vector<1x384xf32> to vector<8x384xf32>
    %146 = arith.addf %143, %145 : vector<8x384xf32>
    %147 = vector.extract_strided_slice %146 {offsets = [0, 0], sizes = [8, 256], strides = [1, 1]} : vector<8x384xf32> to vector<8x256xf32>
    %148 = arith.negf %147 : vector<8x256xf32>
    %149 = math.exp %148 : vector<8x256xf32>
    %cst_56 = arith.constant 1.000000e+00 : f32
    %150 = vector.broadcast %cst_56 : f32 to vector<8x256xf32>
    %151 = arith.addf %150, %149 : vector<8x256xf32>
    %152 = arith.divf %150, %151 : vector<8x256xf32>
    %153 = vector.extract_strided_slice %146 {offsets = [0, 256], sizes = [8, 128], strides = [1, 1]} : vector<8x384xf32> to vector<8x128xf32>
    %154 = math.tanh %153 : vector<8x128xf32>
    %155 = vector.extract_strided_slice %152 {offsets = [0, 0], sizes = [8, 128], strides = [1, 1]} : vector<8x256xf32> to vector<8x128xf32>
    %156 = arith.mulf %155, %154 : vector<8x128xf32>
    %157 = vector.extract_strided_slice %152 {offsets = [0, 128], sizes = [8, 128], strides = [1, 1]} : vector<8x256xf32> to vector<8x128xf32>
    %158 = math.tanh %156 : vector<8x128xf32>
    %159 = arith.mulf %157, %158 : vector<8x128xf32>
    %c62 = arith.constant 62 : index
    %c0_57 = arith.constant 0 : index
    %160 = vector.load %arg2[%c62, %c0_57] : memref<456x384xf32, #tpu.memory_space<vmem>>, vector<128x384xf32>
    %cst_58 = arith.constant dense<0.000000e+00> : vector<8x384xf32>
    %161 = tpu.matmul %159, %160, %cst_58 {dimension_numbers = #tpu.dot_dimension_numbers<[1], [0], [0], [1], [0, 0, 1, 1], [], []>} : vector<8x128xf32>, vector<128x384xf32>, vector<8x384xf32> -> vector<8x384xf32>
    %c190 = arith.constant 190 : index
    %c0_59 = arith.constant 0 : index
    %162 = vector.load %arg2[%c190, %c0_59] : memref<456x384xf32, #tpu.memory_space<vmem>>, vector<1x384xf32>
    %163 = vector.broadcast %162 : vector<1x384xf32> to vector<8x384xf32>
    %164 = arith.addf %161, %163 : vector<8x384xf32>
    %165 = vector.extract_strided_slice %164 {offsets = [0, 0], sizes = [8, 256], strides = [1, 1]} : vector<8x384xf32> to vector<8x256xf32>
    %166 = arith.negf %165 : vector<8x256xf32>
    %167 = math.exp %166 : vector<8x256xf32>
    %cst_60 = arith.constant 1.000000e+00 : f32
    %168 = vector.broadcast %cst_60 : f32 to vector<8x256xf32>
    %169 = arith.addf %168, %167 : vector<8x256xf32>
    %170 = arith.divf %168, %169 : vector<8x256xf32>
    %171 = vector.extract_strided_slice %164 {offsets = [0, 256], sizes = [8, 128], strides = [1, 1]} : vector<8x384xf32> to vector<8x128xf32>
    %172 = math.tanh %171 : vector<8x128xf32>
    %173 = vector.extract_strided_slice %170 {offsets = [0, 0], sizes = [8, 128], strides = [1, 1]} : vector<8x256xf32> to vector<8x128xf32>
    %174 = arith.mulf %173, %172 : vector<8x128xf32>
    %175 = vector.extract_strided_slice %170 {offsets = [0, 128], sizes = [8, 128], strides = [1, 1]} : vector<8x256xf32> to vector<8x128xf32>
    %176 = math.tanh %174 : vector<8x128xf32>
    %177 = arith.mulf %175, %176 : vector<8x128xf32>
    %c191 = arith.constant 191 : index
    %c0_61 = arith.constant 0 : index
    %178 = vector.load %arg2[%c191, %c0_61] : memref<456x384xf32, #tpu.memory_space<vmem>>, vector<128x384xf32>
    %cst_62 = arith.constant dense<0.000000e+00> : vector<8x384xf32>
    %179 = tpu.matmul %177, %178, %cst_62 {dimension_numbers = #tpu.dot_dimension_numbers<[1], [0], [0], [1], [0, 0, 1, 1], [], []>} : vector<8x128xf32>, vector<128x384xf32>, vector<8x384xf32> -> vector<8x384xf32>
    %c319 = arith.constant 319 : index
    %c0_63 = arith.constant 0 : index
    %180 = vector.load %arg2[%c319, %c0_63] : memref<456x384xf32, #tpu.memory_space<vmem>>, vector<1x384xf32>
    %181 = vector.broadcast %180 : vector<1x384xf32> to vector<8x384xf32>
    %182 = arith.addf %179, %181 : vector<8x384xf32>
    %183 = vector.extract_strided_slice %182 {offsets = [0, 0], sizes = [8, 256], strides = [1, 1]} : vector<8x384xf32> to vector<8x256xf32>
    %184 = arith.negf %183 : vector<8x256xf32>
    %185 = math.exp %184 : vector<8x256xf32>
    %cst_64 = arith.constant 1.000000e+00 : f32
    %186 = vector.broadcast %cst_64 : f32 to vector<8x256xf32>
    %187 = arith.addf %186, %185 : vector<8x256xf32>
    %188 = arith.divf %186, %187 : vector<8x256xf32>
    %189 = vector.extract_strided_slice %182 {offsets = [0, 256], sizes = [8, 128], strides = [1, 1]} : vector<8x384xf32> to vector<8x128xf32>
    %190 = math.tanh %189 : vector<8x128xf32>
    %191 = vector.extract_strided_slice %188 {offsets = [0, 0], sizes = [8, 128], strides = [1, 1]} : vector<8x256xf32> to vector<8x128xf32>
    %192 = arith.mulf %191, %190 : vector<8x128xf32>
    %193 = vector.extract_strided_slice %188 {offsets = [0, 128], sizes = [8, 128], strides = [1, 1]} : vector<8x256xf32> to vector<8x128xf32>
    %194 = math.tanh %192 : vector<8x128xf32>
    %195 = arith.mulf %193, %194 : vector<8x128xf32>
    %c320 = arith.constant 320 : index
    %c0_65 = arith.constant 0 : index
    %196 = vector.load %arg2[%c320, %c0_65] : memref<456x384xf32, #tpu.memory_space<vmem>>, vector<128x128xf32>
    %cst_66 = arith.constant dense<0.000000e+00> : vector<8x128xf32>
    %197 = tpu.matmul %195, %196, %cst_66 {dimension_numbers = #tpu.dot_dimension_numbers<[1], [0], [0], [1], [0, 0, 1, 1], [], []>} : vector<8x128xf32>, vector<128x128xf32>, vector<8x128xf32> -> vector<8x128xf32>
    %c448 = arith.constant 448 : index
    %c0_67 = arith.constant 0 : index
    %198 = vector.load %arg2[%c448, %c0_67] : memref<456x384xf32, #tpu.memory_space<vmem>>, vector<1x128xf32>
    %199 = vector.broadcast %198 : vector<1x128xf32> to vector<8x128xf32>
    %200 = arith.addf %197, %199 : vector<8x128xf32>
    %c0_68 = arith.constant 0 : index
    %c0_69 = arith.constant 0 : index
    %201 = vector.load %arg5[%c0_68, %c0_69] : memref<8x256xf32, #tpu.memory_space<vmem>>, vector<8x128xf32>
    tpu.vector_store %arg5[%c0_68, %c0_69], %195 {strides = array<i32>} : memref<8x256xf32, #tpu.memory_space<vmem>>, vector<8x128xf32>,
    %c0_70 = arith.constant 0 : index
    %c128 = arith.constant 128 : index
    %202 = vector.load %arg5[%c0_70, %c128] : memref<8x256xf32, #tpu.memory_space<vmem>>, vector<8x128xf32>
    tpu.vector_store %arg5[%c0_70, %c128], %200 {strides = array<i32>} : memref<8x256xf32, #tpu.memory_space<vmem>>, vector<8x128xf32>,
    return
  }
  func.func @transform_0(%arg0: i32) -> (i32, i32) {
    %c0_i32 = arith.constant 0 : i32
    %c0_i32_0 = arith.constant 0 : i32
    return %arg0, %c0_i32 : i32, i32
  }
  func.func @transform_1(%arg0: i32) -> (i32, i32) {
    %c0_i32 = arith.constant 0 : i32
    %c0_i32_0 = arith.constant 0 : i32
    %c0_i32_1 = arith.constant 0 : i32
    return %c0_i32, %c0_i32_0 : i32, i32
  }
  func.func @transform_2(%arg0: i32) -> (i32, i32) {
    %c0_i32 = arith.constant 0 : i32
    %c0_i32_0 = arith.constant 0 : i32
    %c0_i32_1 = arith.constant 0 : i32
    return %c0_i32, %c0_i32_0 : i32, i32
  }
  func.func @transform_3(%arg0: i32) -> (i32, i32) {
    %c0_i32 = arith.constant 0 : i32
    %c0_i32_0 = arith.constant 0 : i32
    %c0_i32_1 = arith.constant 0 : i32
    return %c0_i32, %c0_i32_0 : i32, i32
  }
  func.func @transform_4(%arg0: i32) -> (i32, i32) {
    %c0_i32 = arith.constant 0 : i32
    %c0_i32_0 = arith.constant 0 : i32
    return %arg0, %c0_i32 : i32, i32
  }
}

</mosaic_0001>

<bundles_post_ra>
// kernel: forward.1
= control target key start
LH: loop header
LB: loop body
LE: loop exit
PB: predicated region body
PF: predicated region fallthrough
CT: control target
= control target key end

     0   :  { %9 = vsyncpa [#allocation3], 0  ;;  %s3337_s0 = inlined_call_operand.hbm [shape: f32[8,16], index: 0, kind: input, shape index: {}]   ;;  %s3338_s1 = inlined_call_operand.hbm [shape: f32[456,384], index: 1, kind: input, shape index: {}]   ;;  %s3339_s2 = inlined_call_operand.hbm [shape: f32[8,2048], index: 2, kind: input, shape index: {}]   ;;  %s3340_s3 = inlined_call_operand.hbm [shape: bf16[64,2048], index: 3, kind: input, shape index: {}]   ;;  %s3341_s4 = inlined_call_operand.vmem [shape: f32[8,256], index: 4, kind: output, shape index: {}]  }
   0x1   :  { %10 = vsyncpa [#allocation5], 0  ;;  %s27_s17 = sshll.u32 %s3338_s1, 4  ;;  %s28_s17 = int_to_ptr.hbm [resolvable:$true] %s27_s17 }
   0x2   :  { %11 = vsyncpa [#allocation8], 0  ;;  %s3086_s18 = smov [#allocation4]   ;;  %s17_s22 = sshll.u32 %s3337_s0, 4  ;;  %s18_s22 = int_to_ptr.hbm [resolvable:$true] %s17_s22 }
   0x3   :  { %s29_s19 = sshll.u32 %s3086_s18, 4  ;;  %s3087_s23 = smov 384   ;;  %s30_s19 = int_to_ptr.vmem [resolvable:$true] %s29_s19 }
   0x4   :  { %s3088_s24 = smov 24   ;;  %s3089_s25 = smov [#allocation2]  }
   0x5   :  { %35 = dma.hbm_to_vmem [thread:$0]  %s28_s17, 21888, %s30_s19, [#allocation5], %s3087_s23, %s3087_s23, %s3088_s24  }
   0x6   :  { %s19_s26 = sshll.u32 %s3089_s25, 4  ;;  %s41_s29 = sshll.u32 %s3339_s2, 4  ;;  %s20_s26 = int_to_ptr.vmem [resolvable:$true] %s19_s26  ;;  %s42_s29 = int_to_ptr.hbm [resolvable:$true] %s41_s29 }
   0x7   :  { %22 = dma.hbm_to_vmem [thread:$0]  %s18_s22, 128, %s20_s26, [#allocation3]  }
   0x8   :  { %s51_s5 = sshll.u32 %s3340_s3, 4  ;;  %s3090_s6 = smov [#allocation6]   ;;  %s52_s5 = int_to_ptr.hbm [resolvable:$true] %s51_s5 }
   0x9   :  { %s43_s7 = sshll.u32 %s3090_s6, 4  ;;  %s3091_s0 = smov [#allocation7]   ;;  %s44_s7 = int_to_ptr.vmem [resolvable:$true] %s43_s7 }
   0xa   :  { %46 = dma.hbm_to_vmem [thread:$0]  %s42_s29, 2048, %s44_s7, [#allocation5]  }
   0xb   :  { %s53_s8 = sshll.u32 %s3091_s0, 4  ;;  %s3092_s9 = smov 1024   ;;  %s54_s8 = int_to_ptr.vmem [resolvable:$true] %s53_s8 }
   0xc   :  { %s3093_s10 = smov 64  }
   0xd   :  { %59 = dma.hbm_to_vmem [thread:$0]  %s52_s5, 8192, %s54_s8, [#allocation8], %s3092_s9, %s3092_s9, %s3093_s10  }
   0xe   :  { %3080 = dma.done.wait [#allocation3], 128  }
   0xf   :  { %3081 = vsyncadd [#allocation3], 4294967168 }
  0x10   :  { %3082 = dma.done.wait [#allocation5], 23936  }
  0x11   :  { %3083 = vsyncadd [#allocation5], 4294943360 }
  0x12   :  { %3084 = dma.done.wait [#allocation8], 8192  }
  0x13   :  { %3085 = vsyncadd [#allocation8], 4294959104  ;;  %v81_v0 = vld [vmem:[#allocation4 + $0x18] sm:$0xff]  ;;  %v82_v1 = vld [vmem:[#allocation4 + $0x30] sm:$0x1]  ;;  %vm87_vm0 = vcmask 1046528  }
  0x14   :  { %v80_v2 = vld [vmem:[#allocation4] sm:$0xfe]  ;;  %v89_v3 = vrot.slane %v81_v0, 1  ;;  %v91_v4 = vrot.slane %v82_v1, 1  ;;  %v77_v6 = vld [vmem:[#allocation2] sm:$0xff]  ;;  %vm95_vm1 = vcmask 130048  }
  0x15   :  { %v88_v5 = vrot.slane %v80_v2, 1  ;;  %v78_v7 = vld [vmem:[#allocation4] ss:$0 sm:$0xff]  ;;  %v83_v11 = vld [vmem:[#allocation4 + $0x31] ss:$0 sm:$0xff]  ;;  %v3094_v16 = vmov 16.0  }
  0x16   :  { %v92_v8 = vsel %vm87_vm0, %v89_v3, %v91_v4  ;;  %v79_v10 = vadd.f32 %v78_v7, %v77_v6  ;;  %2938 = vrcp.f32 %v3094_v16  ;;  %v2569_v28 = vld [vmem:[#allocation7] sm:$0xf]  ;;  %v2865_v30 = vld [vmem:[#allocation7 + $0x4] sm:$0xf]  ;;  %v2577_v33 = vld [vmem:[#allocation7 + $0x8] sm:$0xf] }
  0x17   :  { %v90_v9 = vsel %vm87_vm0, %v88_v5, %v89_v3  ;;  %113 = vmatpush.msra.mxu0 %v92_v8  ;;  %v2873_v29 = vld [vmem:[#allocation7 + $0x3c] sm:$0xf0]  ;;  %v2571_v32 = vld [vmem:[#allocation7 + $0x40] sm:$0xf0]  ;;  %v2874_v34 = vld [vmem:[#allocation7 + $0x44] sm:$0xf0] }
  0x18   :  { %v2570_v31 = vor.u32 %v2873_v29, %v2569_v28  ;;  %v2574_v35 = vor.u32 %v2865_v30, %v2571_v32  ;;  %v2578_v36 = vor.u32 %v2874_v34, %v2577_v33  ;;  %v2866_v37 = vld [vmem:[#allocation7 + $0xc] sm:$0xf]  ;;  %v2867_v40 = vld [vmem:[#allocation7 + $0x14] sm:$0xf]  ;;  %v2593_v42 = vld [vmem:[#allocation7 + $0x18] sm:$0xf] }
  0x19   :  { %114 = vmatpush.msra.mxu0 %v90_v9  ;;  %v2579_v38 = vld [vmem:[#allocation7 + $0x48] sm:$0xf0]  ;;  %v2587_v41 = vld [vmem:[#allocation7 + $0x50] sm:$0xf0]  ;;  %v2876_v44 = vld [vmem:[#allocation7 + $0x54] sm:$0xf0] }
  0x1a   :  { %2566 = vmatmul.msk.f32.vlgmr.msra.gmra.mxu0 %vm95_vm1, %v79_v10  ;;  %297 = vmatpush.bf16.msra.mxu1 %v2570_v31  ;;  %v2582_v39 = vor.u32 %v2866_v37, %v2579_v38  ;;  %v2590_v43 = vor.u32 %v2867_v40, %v2587_v41  ;;  %v2585_v45 = vld [vmem:[#allocation7 + $0x10] sm:$0xf]  ;;  %v2594_v47 = vor.u32 %v2876_v44, %v2593_v42  ;;  %v2868_v49 = vld [vmem:[#allocation7 + $0x1c] sm:$0xf]  ;;  %v2869_v61 = vld [vmem:[#allocation7 + $0x24] sm:$0xf] }
  0x1b   :  { %310 = vmatpush.bf16.msra.mxu2 %v2574_v35  ;;  %323 = vmatpush.bf16.msra.mxu3 %v2578_v36  ;;  %v2875_v46 = vld [vmem:[#allocation7 + $0x4c] sm:$0xf0]  ;;  %v2595_v50 = vld [vmem:[#allocation7 + $0x58] sm:$0xf0]  ;;  %v2603_v62 = vld [vmem:[#allocation7 + $0x60] sm:$0xf0] }
  0x1c   :  { %v2939_v17 = vpop.eup %2938  ;;  %336 = vmatpush.bf16.msrb.mxu0 %v2582_v39  ;;  %v2586_v48 = vor.u32 %v2875_v46, %v2585_v45  ;;  %v2598_v51 = vor.u32 %v2868_v49, %v2595_v50  ;;  %v2609_v0 = vld [vmem:[#allocation7 + $0x28] sm:$0xf]  ;;  %v2601_v2 = vld [vmem:[#allocation7 + $0x20] sm:$0xf]  ;;  %v2870_v5 = vld [vmem:[#allocation7 + $0x2c] sm:$0xf]  ;;  %v2606_v8 = vor.u32 %v2869_v61, %v2603_v62 }
  0x1d   :  { %v124_v18 = vmul.f32 16.0, %v2939_v17  ;;  %vm128_vm2 = vweird.f32 %v2939_v17  ;;  %v2878_v1 = vld [vmem:[#allocation7 + $0x64] sm:$0xf0]  ;;  %v2877_v4 = vld [vmem:[#allocation7 + $0x5c] sm:$0xf0]  ;;  %vm873_vm6 = vcmask 1040384  }
  0x1e   :  { %349 = vmatpush.bf16.msrb.mxu1 %v2586_v48  ;;  %v2611_v6 = vld [vmem:[#allocation7 + $0x68] sm:$0xf0]  ;;  %v2610_v9 = vor.u32 %v2878_v1, %v2609_v0  ;;  %v2617_v16 = vld [vmem:[#allocation7 + $0x30] sm:$0xf]  ;;  %v2890_v28 = vld [vmem:[#allocation7 + $0xc4] sm:$0xf0] }
  0x1f   :  { %v125_v19 = vsub.f32 1.0, %v124_v18  ;;  %362 = vmatpush.bf16.msrb.mxu2 %v2590_v43  ;;  %375 = vmatpush.bf16.msrb.mxu3 %v2594_v47  ;;  %v2872_v18 = vld [vmem:[#allocation7 + $0x3c] sm:$0xf]  ;;  %v2649_v31 = vld [vmem:[#allocation7 + $0x80] sm:$0xf]  ;;  %vm1672_vm13 = vcmask 1042432  }
  0x20   :  { %388 = vmatpush.bf16.msra.mxu0 %v2598_v51  ;;  %v2889_v32 = vld [vmem:[#allocation7 + $0xbc] sm:$0xf0]  ;;  %v2882_v33 = vld [vmem:[#allocation7 + $0x8c] sm:$0xf]  ;;  %v2883_v37 = vld [vmem:[#allocation7 + $0x94] sm:$0xf] }
  0x21   :  { %v126_v20 = vmul.f32 %v2939_v17, %v125_v19  ;;  %v2627_v19 = vld [vmem:[#allocation7 + $0x78] sm:$0xf0]  ;;  %v2650_v34 = vor.u32 %v2889_v32, %v2649_v31  ;;  %v2659_v35 = vld [vmem:[#allocation7 + $0xc8] sm:$0xf0]  ;;  %v2667_v38 = vld [vmem:[#allocation7 + $0xd0] sm:$0xf0] }
  0x22   :  { %v2662_v36 = vor.u32 %v2882_v33, %v2659_v35  ;;  %v2665_v39 = vld [vmem:[#allocation7 + $0x90] sm:$0xf]  ;;  %v2670_v40 = vor.u32 %v2883_v37, %v2667_v38  ;;  %v2673_v41 = vld [vmem:[#allocation7 + $0x98] sm:$0xf]  ;;  %v2884_v45 = vld [vmem:[#allocation7 + $0x9c] sm:$0xf] }
  0x23   :  { %v127_v21 = vadd.f32 %v2939_v17, %v126_v20  ;;  %v2892_v42 = vld [vmem:[#allocation7 + $0xd4] sm:$0xf0]  ;;  %v2891_v44 = vld [vmem:[#allocation7 + $0xcc] sm:$0xf0]  ;;  %v2675_v47 = vld [vmem:[#allocation7 + $0xd8] sm:$0xf0] }
  0x24   :  { %v2674_v43 = vor.u32 %v2892_v42, %v2673_v41  ;;  %v2666_v46 = vor.u32 %v2891_v44, %v2665_v39  ;;  %v2678_v48 = vor.u32 %v2884_v45, %v2675_v47  ;;  %v166_v49 = vld [vmem:[#allocation6] ss:$8 sm:$0xf]  ;;  %v2691_v61 = vld [vmem:[#allocation7 + $0xe8] sm:$0xf0] }
  0x25   :  { %v3134_v22 = vsel %vm128_vm2, %v2939_v17, %v127_v21  ;;  %v2879_v17 = vld [vmem:[#allocation7 + $0x6c] sm:$0xf0]  ;;  %v2707_v35 = vld [vmem:[#allocation7 + $0xf8] sm:$0xf0]  ;;  %vm1910_vm2 = vcmask 1041408  }
  0x26   :  { %v167_v50 = vld [vmem:[#allocation6] ss:$8 sm:$0xf0] }
  0x27   :  { %v3159_v51 = vor.u32 %v167_v50, %v166_v49  ;;  %v2697_v31 = vld [vmem:[#allocation7 + $0xb0] sm:$0xf]  ;;  %v2887_v49 = vld [vmem:[#allocation7 + $0xb4] sm:$0xf] }
  0x28   :  { %v2895_v32 = vld [vmem:[#allocation7 + $0xec] sm:$0xf0]  ;;  %v2699_v50 = vld [vmem:[#allocation7 + $0xf0] sm:$0xf0] }
  0x29   :  { %v177_v1 = vperm.slane %v3159_v51, 2  ;;  %v180_v37 = vperm.slane %v3159_v51, 5  ;;  %v181_v39 = vperm.slane %v3159_v51, 6  ;;  %v170_v45 = vld [vmem:[#allocation6 + $0x40] ss:$8 sm:$0xf] }
  0x97   :  { %v116_v12 = vpop.f32.mrf.mxu0 }
  0x98   :  { %v117_v13 = vadd.f32 %v116_v12, %v83_v11  ;;  %v2614_v11 = vor.u32 %v2870_v5, %v2611_v6  ;;  %v2871_v12 = vld [vmem:[#allocation7 + $0x34] sm:$0xf] }
  0x9a   :  { %v119_v14 = vadd.f32 %v117_v13, %v79_v10  ;;  %v2602_v10 = vor.u32 %v2877_v4, %v2601_v2  ;;  %v2619_v13 = vld [vmem:[#allocation7 + $0x70] sm:$0xf0] }
  0x9b   :  { %v2622_v20 = vor.u32 %v2871_v12, %v2619_v13 }
  0x9c   :  { %v120_v15 = vsel %vm95_vm1, %v119_v14, 0.0 }
  0x9d   :  { %121 = vadd.xlane.f32.xlu0 %v120_v15  ;;  %v2880_v15 = vld [vmem:[#allocation7 + $0x74] sm:$0xf0] }
 0x110   :  { %v122_v23 = vpop.xlane.xlu0 %121 }
 0x111   :  { %v130_v24 = vmul.f32 %v3134_v22, %v122_v23  ;;  %v2618_v23 = vor.u32 %v2879_v17, %v2617_v16 }
 0x113   :  { %v131_v25 = vsub.f32 %v119_v14, %v130_v24  ;;  %v2625_v14 = vld [vmem:[#allocation7 + $0x38] sm:$0xf]  ;;  %v2630_v24 = vor.u32 %v2872_v18, %v2627_v19 }
 0x114   :  { %v2626_v21 = vor.u32 %v2880_v15, %v2625_v14  ;;  %v2689_v14 = vld [vmem:[#allocation7 + $0xa8] sm:$0xf] }
 0x115   :  { %v132_v26 = vmul.f32 %v131_v25, %v131_v25  ;;  %v2894_v15 = vld [vmem:[#allocation7 + $0xe4] sm:$0xf0] }
 0x117   :  { %v133_v27 = vsel %vm95_vm1, %v132_v26, 0.0  ;;  %v2651_v26 = vld [vmem:[#allocation7 + $0xc0] sm:$0xf0] }
 0x118   :  { %134 = vadd.xlane.f32.xlu0 %v133_v27  ;;  %v2657_v27 = vld [vmem:[#allocation7 + $0x88] sm:$0xf] }
 0x119   :  { %v2658_v30 = vor.u32 %v2890_v28, %v2657_v27 }
 0x18b   :  { %v135_v52 = vpop.xlane.xlu0 %134 }
 0x18c   :  { %v136_v53 = vmul.f32 %v135_v52, %v3134_v22  ;;  %v175_v52 = vperm.slane %v3159_v51, 0 }
 0x18e   :  { %v137_v54 = vadd.f32 1e-05, %v136_v53  ;;  %v178_v53 = vperm.slane %v3159_v51, 3 }
 0x190   :  { %2940 = vrsqrt.f32 %v137_v54  ;;  %vm144_vm4 = vweird.f32 %v137_v54 }
 0x196   :  { %v2941_v55 = vpop.eup %2940 }
 0x197   :  { %v139_v56 = vmul.f32 %v2941_v55, %v137_v54  ;;  %vm145_vm3 = vweird.f32 %v2941_v55 }
 0x198   :  { %vm146_vm5 = vmor %vm144_vm4, %vm145_vm3 }
 0x199   :  { %v140_v57 = vmul.f32 %v2941_v55, %v139_v56 }
 0x19b   :  { %v141_v58 = vmul.f32 0.5, %v140_v57  ;;  %v2681_v57 = vld [vmem:[#allocation7 + $0xa0] sm:$0xf] }
 0x19d   :  { %v142_v59 = vsub.f32 1.5, %v141_v58  ;;  %v2893_v58 = vld [vmem:[#allocation7 + $0xdc] sm:$0xf0] }
 0x19e   :  { %v2682_v2 = vor.u32 %v2893_v58, %v2681_v57 }
 0x19f   :  { %v143_v60 = vmul.f32 %v2941_v55, %v142_v59 }
 0x1a1   :  { %v147_v63 = vsel %vm146_vm5, %v2941_v55, %v143_v60  ;;  %v2886_v60 = vld [vmem:[#allocation7 + $0xac] sm:$0xf] }
 0x1a2   :  { %v3139_v3 = vmul.f32 %v147_v63, %v131_v25  ;;  %v2881_v25 = vld [vmem:[#allocation7 + $0x84] sm:$0xf]  ;;  %v176_v63 = vperm.slane %v3159_v51, 1  ;;  %v2694_v5 = vor.u32 %v2886_v60, %v2691_v61 }
 0x1a3   :  { %v2654_v29 = vor.u32 %v2881_v25, %v2651_v26  ;;  %v182_v26 = vperm.slane %v3159_v51, 7 }
 0x1a4   :  { %v149_v7 = vpack.c.bf16 %v3139_v3, %v3139_v3 }
 0x1a6   :  { %2631 = vmatmul.msk.bf16.vlgmr.msra.gmra.mxu1 %vm95_vm1, %v149_v7  ;;  %2632 = vmatmul.msk.bf16.vlgmr.msra.gmra.mxu2 %vm95_vm1, %v149_v7 }
 0x1a7   :  { %2633 = vmatmul.msk.bf16.vlgmr.msra.gmra.mxu3 %vm95_vm1, %v149_v7  ;;  %2634 = vmatmul.msk.bf16.vlgmr.msrb.gmra.mxu0 %vm95_vm1, %v149_v7 }
 0x1a8   :  { %414 = vmatpush.bf16.msra.mxu2 %v2606_v8  ;;  %427 = vmatpush.bf16.msra.mxu3 %v2610_v9 }
 0x1a9   :  { %401 = vmatpush.bf16.msra.mxu1 %v2602_v10  ;;  %440 = vmatpush.bf16.msrb.mxu0 %v2614_v11  ;;  %v2885_v10 = vld [vmem:[#allocation7 + $0xa4] sm:$0xf] }
 0x1aa   :  { %v2683_v11 = vld [vmem:[#allocation7 + $0xe0] sm:$0xf0] }
 0x1ab   :  { %v2686_v19 = vor.u32 %v2885_v10, %v2683_v11 }
 0x1b6   :  { %2635 = vmatmul.msk.bf16.vlgmr.msrb.gmra.mxu1 %vm95_vm1, %v149_v7  ;;  %2636 = vmatmul.msk.bf16.vlgmr.msrb.gmra.mxu2 %vm95_vm1, %v149_v7 }
 0x1b7   :  { %2637 = vmatmul.msk.bf16.vlgmr.msrb.gmra.mxu3 %vm95_vm1, %v149_v7  ;;  %2638 = vmatmul.msk.bf16.vlgmr.msra.gmra.mxu0 %vm95_vm1, %v149_v7 }
 0x1b8   :  { %466 = vmatpush.bf16.msrb.mxu2 %v2622_v20  ;;  %479 = vmatpush.bf16.msrb.mxu3 %v2626_v21  ;;  %v2690_v21 = vor.u32 %v2894_v15, %v2689_v14 }
 0x1b9   :  { %453 = vmatpush.bf16.msrb.mxu1 %v2618_v23  ;;  %492 = vmatpush.bf16.msra.mxu0 %v2630_v24  ;;  %v179_v24 = vperm.slane %v3159_v51, 4 }
 0x1c6   :  { %2639 = vmatmul.msk.bf16.vlgmr.msra.gmra.mxu1 %vm95_vm1, %v149_v7  ;;  %2640 = vmatmul.msk.bf16.vlgmr.msra.gmra.mxu2 %vm95_vm1, %v149_v7 }
 0x1c7   :  { %2641 = vmatmul.msk.bf16.vlgmr.msra.gmra.mxu3 %vm95_vm1, %v149_v7  ;;  %2642 = vmatmul.msk.bf16.vlgmr.msrb.gmra.mxu0 %vm95_vm1, %v149_v7 }
 0x1c8   :  { %647 = vmatpush.bf16.xpose.msra.mxu2 %v2654_v29  ;;  %660 = vmatpush.bf16.xpose.msra.mxu3 %v2658_v30 }
 0x1c9   :  { %634 = vmatpush.bf16.xpose.msra.mxu1 %v2650_v34  ;;  %673 = vmatpush.bf16.xpose.msrb.mxu0 %v2662_v36  ;;  %v2888_v34 = vld [vmem:[#allocation7 + $0xbc] sm:$0xf] }
 0x1ca   :  { %v2710_v42 = vor.u32 %v2888_v34, %v2707_v35 }
 0x1d6   :  { %2643 = vmatmul.msk.bf16.vlgmr.msrb.gmra.mxu1 %vm95_vm1, %v149_v7  ;;  %2644 = vmatmul.msk.bf16.vlgmr.msrb.gmra.mxu2 %vm95_vm1, %v149_v7 }
 0x1d7   :  { %2645 = vmatmul.msk.bf16.vlgmr.msrb.gmra.mxu3 %vm95_vm1, %v149_v7  ;;  %2646 = vmatmul.msk.bf16.vlgmr.msra.gmra.mxu0 %vm95_vm1, %v149_v7 }
 0x1d8   :  { %699 = vmatpush.bf16.xpose.msrb.mxu2 %v2670_v40  ;;  %712 = vmatpush.bf16.xpose.msrb.mxu3 %v2674_v43  ;;  %v2698_v40 = vor.u32 %v2895_v32, %v2697_v31 }
 0x1d9   :  { %686 = vmatpush.bf16.xpose.msrb.mxu1 %v2666_v46  ;;  %725 = vmatpush.bf16.xpose.msra.mxu0 %v2678_v48  ;;  %v171_v46 = vld [vmem:[#allocation6 + $0x40] ss:$8 sm:$0xf0] }
 0x1da   :  { %v172_v57 = vor.u32 %v171_v46, %v170_v45 }
 0x1dc   :  { %v185_v11 = vperm.slane %v172_v57, 2  ;;  %v188_v34 = vperm.slane %v172_v57, 5 }
 0x223   :  { %v299_v54 = vpop.f32.mrf.mxu1 }
 0x224   :  { %v300_v55 = vadd.f32 %v299_v54, %v175_v52  ;;  %v338_v56 = vpop.f32.mrf.mxu0  ;;  %v2705_v54 = vld [vmem:[#allocation7 + $0xb8] sm:$0xf] }
 0x225   :  { %v339_v59 = vadd.f32 %v338_v56, %v178_v53 }
 0x226   :  { %v498_v62 = vmax.f32 %v300_v55, 0.0  ;;  %v2896_v55 = vld [vmem:[#allocation7 + $0xf4] sm:$0xf0] }
 0x227   :  { %v501_v0 = vmax.f32 %v339_v59, 0.0  ;;  %v2702_v59 = vor.u32 %v2887_v49, %v2699_v50  ;;  %v2706_v61 = vor.u32 %v2896_v55, %v2705_v54 }
 0x228   :  { %v514_v4 = vpack.c.bf16 %v498_v62, %v498_v62 }
 0x229   :  { %v517_v6 = vpack.c.bf16 %v501_v0, %v501_v0  ;;  %v312_v7 = vpop.f32.mrf.mxu2 }
 0x22a   :  { %v313_v8 = vadd.f32 %v312_v7, %v176_v63  ;;  %v325_v9 = vpop.f32.mrf.mxu3  ;;  %635 = vmatmul.bf16.vlgmr.msra.gmra.mxu1 %v514_v4  ;;  %v183_v63 = vperm.slane %v172_v57, 0 }
 0x22b   :  { %v326_v12 = vadd.f32 %v325_v9, %v177_v1  ;;  %674 = vmatmul.bf16.vlgmr.msrb.gmra.mxu0 %v517_v6  ;;  %v301_v13 = vpop.f32.mrf.mxu1  ;;  %738 = vmatpush.bf16.xpose.msra.mxu1 %v2682_v2  ;;  %v186_v1 = vperm.slane %v172_v57, 3  ;;  %v184_v9 = vperm.slane %v172_v57, 1 }
 0x22c   :  { %v499_v16 = vmax.f32 %v313_v8, 0.0  ;;  %v340_v17 = vpop.f32.mrf.mxu0  ;;  %777 = vmatpush.bf16.xpose.msrb.mxu0 %v2694_v5 }
 0x22d   :  { %v500_v18 = vmax.f32 %v326_v12, 0.0 }
 0x22e   :  { %v515_v20 = vpack.c.bf16 %v499_v16, %v499_v16 }
 0x22f   :  { %v516_v23 = vpack.c.bf16 %v500_v18, %v500_v18 }
 0x230   :  { %648 = vmatmul.bf16.vlgmr.msra.gmra.mxu2 %v515_v20 }
 0x231   :  { %661 = vmatmul.bf16.vlgmr.msra.gmra.mxu3 %v516_v23  ;;  %v314_v25 = vpop.f32.mrf.mxu2  ;;  %751 = vmatpush.bf16.xpose.msra.mxu2 %v2686_v19 }
 0x232   :  { %v327_v27 = vpop.f32.mrf.mxu3  ;;  %764 = vmatpush.bf16.xpose.msra.mxu3 %v2690_v21  ;;  %v187_v25 = vperm.slane %v172_v57, 4 }
 0x233   :  { %v351_v28 = vpop.f32.mrf.mxu1  ;;  %v190_v27 = vperm.slane %v172_v57, 7 }
 0x234   :  { %v352_v29 = vadd.f32 %v351_v28, %v179_v24  ;;  %v390_v30 = vpop.f32.mrf.mxu0 }
 0x235   :  { %v391_v33 = vadd.f32 %v390_v30, %v182_v26 }
 0x236   :  { %v502_v36 = vmax.f32 %v352_v29, 0.0 }
 0x237   :  { %v505_v38 = vmax.f32 %v391_v33, 0.0 }
 0x238   :  { %v518_v41 = vpack.c.bf16 %v502_v36, %v502_v36  ;;  %v189_v36 = vperm.slane %v172_v57, 6  ;;  %v546_v57 = vld [vmem:[#allocation4 + $0x32] ss:$0 sm:$0xff] }
 0x239   :  { %v521_v43 = vpack.c.bf16 %v505_v38, %v505_v38  ;;  %v364_v44 = vpop.f32.mrf.mxu2 }
 0x23a   :  { %v365_v47 = vadd.f32 %v364_v44, %v180_v37  ;;  %v377_v48 = vpop.f32.mrf.mxu3  ;;  %687 = vmatmul.bf16.vlgmr.msrb.gmra.mxu1 %v518_v41 }
 0x23b   :  { %v378_v52 = vadd.f32 %v377_v48, %v181_v39  ;;  %726 = vmatmul.bf16.vlgmr.msra.gmra.mxu0 %v521_v43  ;;  %v353_v53 = vpop.f32.mrf.mxu1  ;;  %790 = vmatpush.bf16.xpose.msrb.mxu1 %v2698_v40 }
 0x23c   :  { %v503_v56 = vmax.f32 %v365_v47, 0.0  ;;  %v392_v51 = vpop.f32.mrf.mxu0  ;;  %829 = vmatpush.bf16.xpose.msra.mxu0 %v2710_v42 }
 0x23d   :  { %v504_v58 = vmax.f32 %v378_v52, 0.0 }
 0x23e   :  { %v519_v60 = vpack.c.bf16 %v503_v56, %v503_v56 }
 0x23f   :  { %v520_v62 = vpack.c.bf16 %v504_v58, %v504_v58 }
 0x240   :  { %700 = vmatmul.bf16.vlgmr.msrb.gmra.mxu2 %v519_v60 }
 0x241   :  { %713 = vmatmul.bf16.vlgmr.msrb.gmra.mxu3 %v520_v62  ;;  %v366_v0 = vpop.f32.mrf.mxu2  ;;  %803 = vmatpush.bf16.xpose.msrb.mxu2 %v2702_v59 }
 0x242   :  { %v379_v2 = vpop.f32.mrf.mxu3  ;;  %816 = vmatpush.bf16.xpose.msrb.mxu3 %v2706_v61 }
 0x243   :  { %v403_v4 = vpop.f32.mrf.mxu1 }
 0x244   :  { %v404_v5 = vadd.f32 %v403_v4, %v183_v63  ;;  %v442_v6 = vpop.f32.mrf.mxu0 }
 0x245   :  { %v443_v7 = vadd.f32 %v442_v6, %v186_v1 }
 0x246   :  { %v506_v8 = vmax.f32 %v404_v5, 0.0 }
 0x247   :  { %v509_v10 = vmax.f32 %v443_v7, 0.0 }
 0x248   :  { %v522_v12 = vpack.c.bf16 %v506_v8, %v506_v8 }
 0x249   :  { %v525_v13 = vpack.c.bf16 %v509_v10, %v509_v10  ;;  %v416_v14 = vpop.f32.mrf.mxu2 }
 0x24a   :  { %v417_v15 = vadd.f32 %v416_v14, %v184_v9  ;;  %v429_v16 = vpop.f32.mrf.mxu3  ;;  %739 = vmatmul.bf16.vlgmr.msra.gmra.mxu1 %v522_v12 }
 0x24b   :  { %v430_v17 = vadd.f32 %v429_v16, %v185_v11  ;;  %778 = vmatmul.bf16.vlgmr.msrb.gmra.mxu0 %v525_v13  ;;  %v405_v18 = vpop.f32.mrf.mxu1 }
 0x24c   :  { %v507_v19 = vmax.f32 %v417_v15, 0.0  ;;  %v444_v20 = vpop.f32.mrf.mxu0 }
 0x24d   :  { %v508_v21 = vmax.f32 %v430_v17, 0.0 }
 0x24e   :  { %v523_v23 = vpack.c.bf16 %v507_v19, %v507_v19 }
 0x24f   :  { %v524_v24 = vpack.c.bf16 %v508_v21, %v508_v21 }
 0x250   :  { %752 = vmatmul.bf16.vlgmr.msra.gmra.mxu2 %v523_v23 }
 0x251   :  { %765 = vmatmul.bf16.vlgmr.msra.gmra.mxu3 %v524_v24  ;;  %v418_v26 = vpop.f32.mrf.mxu2 }
 0x252   :  { %v431_v28 = vpop.f32.mrf.mxu3 }
 0x253   :  { %v455_v29 = vpop.f32.mrf.mxu1 }
 0x254   :  { %v456_v30 = vadd.f32 %v455_v29, %v187_v25  ;;  %v494_v31 = vpop.f32.mrf.mxu0 }
 0x255   :  { %v495_v32 = vadd.f32 %v494_v31, %v190_v27 }
 0x256   :  { %v510_v33 = vmax.f32 %v456_v30, 0.0  ;;  %v835_v30 = vld [vmem:[#allocation4 + $0x33] ss:$0 sm:$0xff] }
 0x257   :  { %v513_v35 = vmax.f32 %v495_v32, 0.0 }
 0x258   :  { %v526_v37 = vpack.c.bf16 %v510_v33, %v510_v33 }
 0x259   :  { %v529_v38 = vpack.c.bf16 %v513_v35, %v513_v35  ;;  %v468_v39 = vpop.f32.mrf.mxu2  ;;  %v836_v35 = vmul.f32 %v835_v30, %v3139_v3  ;;  %v868_v3 = vld [vmem:[#allocation4 + $0x60] sm:$0x7f] }
 0x25a   :  { %v469_v40 = vadd.f32 %v468_v39, %v188_v34  ;;  %v481_v41 = vpop.f32.mrf.mxu3  ;;  %791 = vmatmul.bf16.vlgmr.msrb.gmra.mxu1 %v526_v37 }
 0x25b   :  { %v482_v42 = vadd.f32 %v481_v41, %v189_v36  ;;  %830 = vmatmul.bf16.vlgmr.msra.gmra.mxu0 %v529_v38  ;;  %v457_v43 = vpop.f32.mrf.mxu1  ;;  %v837_v36 = vld [vmem:[#allocation4 + $0x34] ss:$0 sm:$0xff] }
 0x25c   :  { %v511_v44 = vmax.f32 %v469_v40, 0.0  ;;  %v496_v45 = vpop.f32.mrf.mxu0  ;;  %v838_v39 = vadd.f32 %v837_v36, %v836_v35  ;;  %v2732_v35 = vld [vmem:[#allocation7 + $0x150] sm:$0xf0]  ;;  %v2738_v36 = vld [vmem:[#allocation7 + $0x118] sm:$0xf] }
 0x25d   :  { %v512_v46 = vmax.f32 %v482_v42, 0.0 }
 0x25e   :  { %v527_v47 = vpack.c.bf16 %v511_v44, %v511_v44 }
 0x25f   :  { %v528_v48 = vpack.c.bf16 %v512_v46, %v512_v46 }
 0x260   :  { %804 = vmatmul.bf16.vlgmr.msrb.gmra.mxu2 %v527_v47 }
 0x261   :  { %817 = vmatmul.bf16.vlgmr.msrb.gmra.mxu3 %v528_v48  ;;  %v470_v49 = vpop.f32.mrf.mxu2 }
 0x262   :  { %v483_v50 = vpop.f32.mrf.mxu3  ;;  %v867_v49 = vld [vmem:[#allocation4 + $0x48] sm:$0xff] }
 0x263   :  { %v875_v50 = vrot.slane %v867_v49, 7 }
 0x2a7   :  { %v636_v52 = vpop.f32.mrf.mxu1 }
 0x2a8   :  { %v675_v53 = vpop.f32.mrf.mxu0  ;;  %v637_v59 = vadd.f32 %v636_v52, %v546_v57  ;;  %v877_v52 = vrot.slane %v868_v3, 7 }
 0x2af   :  { %v638_v54 = vpop.f32.mrf.mxu1 }
 0x2b0   :  { %v677_v55 = vpop.f32.mrf.mxu0  ;;  %v878_v54 = vsel %vm873_vm6, %v875_v50, %v877_v52  ;;  %v2746_v52 = vld [vmem:[#allocation7 + $0x120] sm:$0xf] }
 0x2b1   :  { %898 = vmatpush.msra.mxu1 %v878_v54 }
 0x2b3   :  { %v649_v56 = vpop.f32.mrf.mxu2 }
 0x2b4   :  { %v662_v51 = vpop.f32.mrf.mxu3  ;;  %v650_v61 = vadd.f32 %v649_v56, %v637_v59 }
 0x2b6   :  { %v663_v0 = vadd.f32 %v662_v51, %v650_v61 }
 0x2b7   :  { %v688_v58 = vpop.f32.mrf.mxu1 }
 0x2b8   :  { %v727_v60 = vpop.f32.mrf.mxu0  ;;  %v676_v4 = vadd.f32 %v675_v53, %v663_v0  ;;  %v866_v53 = vld [vmem:[#allocation4 + $0x30] sm:$0x80] }
 0x2b9   :  { %v874_v55 = vrot.slane %v866_v53, 7  ;;  %v2909_v53 = vld [vmem:[#allocation7 + $0x15c] sm:$0xf0] }
 0x2ba   :  { %v689_v7 = vadd.f32 %v688_v58, %v676_v4 }
 0x2bb   :  { %v651_v62 = vpop.f32.mrf.mxu2  ;;  %v876_v56 = vsel %vm873_vm6, %v874_v55, %v875_v50  ;;  %v2901_v55 = vld [vmem:[#allocation7 + $0x124] sm:$0xf] }
 0x2bc   :  { %v664_v63 = vpop.f32.mrf.mxu3  ;;  %899 = vmatpush.msra.mxu1 %v876_v56  ;;  %v2748_v56 = vld [vmem:[#allocation7 + $0x160] sm:$0xf0] }
 0x2bf   :  { %v690_v1 = vpop.f32.mrf.mxu1 }
 0x2c0   :  { %v729_v2 = vpop.f32.mrf.mxu0  ;;  %v840_v1 = vld [vmem:[#allocation4 + $0x35] ss:$0 sm:$0xff] }
 0x2c3   :  { %v701_v5 = vpop.f32.mrf.mxu2 }
 0x2c4   :  { %v714_v6 = vpop.f32.mrf.mxu3  ;;  %v702_v9 = vadd.f32 %v701_v5, %v689_v7  ;;  %v841_v5 = vld [vmem:[#allocation4 + $0x36] ss:$0 sm:$0xff] }
 0x2c6   :  { %v715_v12 = vadd.f32 %v714_v6, %v702_v9 }
 0x2c7   :  { %v740_v8 = vpop.f32.mrf.mxu1 }
 0x2c8   :  { %v779_v10 = vpop.f32.mrf.mxu0  ;;  %v728_v15 = vadd.f32 %v727_v60, %v715_v12 }
 0x2ca   :  { %v741_v18 = vadd.f32 %v740_v8, %v728_v15  ;;  %v869_v8 = vld [vmem:[#allocation4 + $0x67] ss:$0 sm:$0xff] }
 0x2cb   :  { %v703_v11 = vpop.f32.mrf.mxu2 }
 0x2cc   :  { %v716_v13 = vpop.f32.mrf.mxu3 }
 0x2cf   :  { %v742_v14 = vpop.f32.mrf.mxu1 }
 0x2d0   :  { %v781_v16 = vpop.f32.mrf.mxu0 }
 0x2d3   :  { %v753_v17 = vpop.f32.mrf.mxu2 }
 0x2d4   :  { %v766_v19 = vpop.f32.mrf.mxu3  ;;  %v754_v20 = vadd.f32 %v753_v17, %v741_v18  ;;  %v2714_v18 = vld [vmem:[#allocation7 + $0x100] sm:$0xf] }
 0x2d6   :  { %v767_v24 = vadd.f32 %v766_v19, %v754_v20  ;;  %v2905_v19 = vld [vmem:[#allocation7 + $0x13c] sm:$0xf0]  ;;  %v2897_v20 = vld [vmem:[#allocation7 + $0x104] sm:$0xf] }
 0x2d7   :  { %v792_v21 = vpop.f32.mrf.mxu1 }
 0x2d8   :  { %v831_v23 = vpop.f32.mrf.mxu0  ;;  %v780_v27 = vadd.f32 %v779_v10, %v767_v24  ;;  %v2722_v24 = vld [vmem:[#allocation7 + $0x108] sm:$0xf] }
 0x2da   :  { %v793_v31 = vadd.f32 %v792_v21, %v780_v27  ;;  %v2715_v21 = vor.u32 %v2905_v19, %v2714_v18  ;;  %v2796_v18 = vld [vmem:[#allocation7 + $0x1c0] sm:$0xf0] }
 0x2db   :  { %v755_v25 = vpop.f32.mrf.mxu2 }
 0x2dc   :  { %v768_v26 = vpop.f32.mrf.mxu3  ;;  %v2906_v25 = vld [vmem:[#allocation7 + $0x144] sm:$0xf0]  ;;  %1076 = vmatpush.bf16.msra.mxu2 %v2715_v21 }
 0x2dd   :  { %v2723_v27 = vor.u32 %v2906_v25, %v2722_v24  ;;  %v2802_v21 = vld [vmem:[#allocation7 + $0x188] sm:$0xf]  ;;  %v2914_v24 = vld [vmem:[#allocation7 + $0x18c] sm:$0xf] }
 0x2df   :  { %v794_v28 = vpop.f32.mrf.mxu1  ;;  %1102 = vmatpush.bf16.msrb.mxu0 %v2723_v27 }
 0x2e0   :  { %v833_v29 = vpop.f32.mrf.mxu0  ;;  %v2898_v28 = vld [vmem:[#allocation7 + $0x10c] sm:$0xf] }
 0x2e1   :  { %v2724_v29 = vld [vmem:[#allocation7 + $0x148] sm:$0xf0] }
 0x2e2   :  { %v2727_v30 = vor.u32 %v2898_v28, %v2724_v29  ;;  %v2810_v28 = vld [vmem:[#allocation7 + $0x190] sm:$0xf] }
 0x2e3   :  { %v805_v32 = vpop.f32.mrf.mxu2  ;;  %v2923_v29 = vld [vmem:[#allocation7 + $0x1cc] sm:$0xf0] }
 0x2e4   :  { %v806_v33 = vadd.f32 %v805_v32, %v793_v31  ;;  %v818_v34 = vpop.f32.mrf.mxu3  ;;  %1115 = vmatpush.bf16.msrb.mxu1 %v2727_v30  ;;  %v2730_v31 = vld [vmem:[#allocation7 + $0x110] sm:$0xf]  ;;  %v2811_v30 = vor.u32 %v2923_v29, %v2810_v28 }
 0x2e5   :  { %v2907_v32 = vld [vmem:[#allocation7 + $0x14c] sm:$0xf0] }
 0x2e6   :  { %v819_v37 = vadd.f32 %v818_v34, %v806_v33  ;;  %v2899_v33 = vld [vmem:[#allocation7 + $0x114] sm:$0xf]  ;;  %v2731_v34 = vor.u32 %v2907_v32, %v2730_v31 }
 0x2e7   :  { %v2915_v31 = vld [vmem:[#allocation7 + $0x194] sm:$0xf] }
 0x2e8   :  { %v832_v38 = vadd.f32 %v831_v23, %v819_v37  ;;  %v2716_v23 = vld [vmem:[#allocation7 + $0x140] sm:$0xf0]  ;;  %v2908_v37 = vld [vmem:[#allocation7 + $0x154] sm:$0xf0]  ;;  %1128 = vmatpush.bf16.msrb.mxu2 %v2731_v34  ;;  %v2812_v32 = vld [vmem:[#allocation7 + $0x1d0] sm:$0xf0] }
 0x2e9   :  { %v2719_v26 = vor.u32 %v2897_v20, %v2716_v23  ;;  %v2922_v23 = vld [vmem:[#allocation7 + $0x1c4] sm:$0xf0]  ;;  %v2818_v34 = vld [vmem:[#allocation7 + $0x198] sm:$0xf] }
 0x2ea   :  { %v839_v40 = vadd.f32 %v838_v39, %v832_v38  ;;  %v2735_v38 = vor.u32 %v2899_v33, %v2732_v35  ;;  %v2739_v39 = vor.u32 %v2908_v37, %v2738_v36  ;;  %v2803_v25 = vor.u32 %v2922_v23, %v2802_v21  ;;  %v2924_v35 = vld [vmem:[#allocation7 + $0x1d4] sm:$0xf0]  ;;  %v2916_v36 = vld [vmem:[#allocation7 + $0x19c] sm:$0xf] }
 0x2eb   :  { %v807_v41 = vpop.f32.mrf.mxu2  ;;  %1089 = vmatpush.bf16.msra.mxu3 %v2719_v26  ;;  %v2804_v26 = vld [vmem:[#allocation7 + $0x1c8] sm:$0xf0]  ;;  %v2815_v33 = vor.u32 %v2915_v31, %v2812_v32  ;;  %v2819_v37 = vor.u32 %v2924_v35, %v2818_v34  ;;  %v949_v31 = vld [vmem:[#allocation6 + $0x41] ss:$8 sm:$0xf] }
 0x2ec   :  { %v820_v42 = vpop.f32.mrf.mxu3  ;;  %v842_v43 = vsel %vm95_vm1, %v839_v40, 0.0  ;;  %v2740_v41 = vld [vmem:[#allocation7 + $0x158] sm:$0xf0]  ;;  %1154 = vmatpush.bf16.msra.mxu0 %v2739_v39  ;;  %v2807_v27 = vor.u32 %v2914_v24, %v2804_v26  ;;  %v2928_v24 = vld [vmem:[#allocation7 + $0x1f4] sm:$0xf0] }
 0x2ed   :  { %843 = vadd.xlane.f32.xlu1 %v842_v43  ;;  %v2852_v26 = vld [vmem:[#allocation7 + $0x1f8] sm:$0xf0] }
 0x2ef   :  { %1141 = vmatpush.bf16.msrb.mxu3 %v2735_v38  ;;  %v2820_v38 = vld [vmem:[#allocation7 + $0x1d8] sm:$0xf0] }
 0x2f0   :  { %v2823_v39 = vor.u32 %v2916_v36, %v2820_v38  ;;  %v950_v38 = vld [vmem:[#allocation6 + $0x41] ss:$8 sm:$0xf0] }
 0x360   :  { %v844_v44 = vpop.xlane.xlu1 %843 }
 0x361   :  { %v845_v45 = vmul.f32 %v844_v44, %v3134_v22 }
 0x363   :  { %v846_v46 = vsub.f32 %v839_v40, %v845_v45  ;;  %v2900_v40 = vld [vmem:[#allocation7 + $0x11c] sm:$0xf] }
 0x364   :  { %v2743_v42 = vor.u32 %v2900_v40, %v2740_v41  ;;  %v945_v40 = vld [vmem:[#allocation6 + $0x1] ss:$8 sm:$0xf] }
 0x365   :  { %v847_v47 = vmul.f32 %v846_v46, %v846_v46  ;;  %v946_v41 = vld [vmem:[#allocation6 + $0x1] ss:$8 sm:$0xf0] }
 0x367   :  { %v848_v48 = vsel %vm95_vm1, %v847_v47, 0.0 }
 0x368   :  { %849 = vadd.xlane.f32.xlu1 %v848_v48 }
 0x3db   :  { %v850_v51 = vpop.xlane.xlu1 %849 }
 0x3dc   :  { %v851_v57 = vmul.f32 %v850_v51, %v3134_v22  ;;  %v2754_v51 = vld [vmem:[#allocation7 + $0x128] sm:$0xf] }
 0x3de   :  { %v852_v58 = vadd.f32 1e-05, %v851_v57 }
 0x3e0   :  { %2942 = vrsqrt.f32 %v852_v58  ;;  %vm859_vm8 = vweird.f32 %v852_v58 }
 0x3e6   :  { %v2943_v59 = vpop.eup %2942 }
 0x3e7   :  { %v854_v60 = vmul.f32 %v2943_v59, %v852_v58  ;;  %vm860_vm7 = vweird.f32 %v2943_v59  ;;  %v2910_v58 = vld [vmem:[#allocation7 + $0x164] sm:$0xf0] }
 0x3e8   :  { %vm861_vm9 = vmor %vm859_vm8, %vm860_vm7 }
 0x3e9   :  { %v855_v61 = vmul.f32 %v2943_v59, %v854_v60  ;;  %v2756_v60 = vld [vmem:[#allocation7 + $0x168] sm:$0xf0] }
 0x3eb   :  { %v856_v62 = vmul.f32 0.5, %v855_v61 }
 0x3ed   :  { %v857_v63 = vsub.f32 1.5, %v856_v62  ;;  %v2747_v62 = vor.u32 %v2909_v53, %v2746_v52  ;;  %v2836_v52 = vld [vmem:[#allocation7 + $0x1e8] sm:$0xf0] }
 0x3ef   :  { %v858_v0 = vmul.f32 %v2943_v59, %v857_v63  ;;  %v2751_v63 = vor.u32 %v2901_v55, %v2748_v56 }
 0x3f1   :  { %v862_v2 = vsel %vm861_vm9, %v2943_v59, %v858_v0  ;;  %v2902_v59 = vld [vmem:[#allocation7 + $0x12c] sm:$0xf]  ;;  %v2755_v0 = vor.u32 %v2910_v58, %v2754_v51 }
 0x3f2   :  { %v863_v4 = vmul.f32 %v862_v2, %v846_v46  ;;  %v2762_v2 = vld [vmem:[#allocation7 + $0x130] sm:$0xf] }
 0x3f4   :  { %v864_v6 = vmul.f32 %v863_v4, %v840_v1  ;;  %v2759_v1 = vor.u32 %v2902_v59, %v2756_v60  ;;  %v2911_v4 = vld [vmem:[#allocation7 + $0x16c] sm:$0xf0] }
 0x3f6   :  { %v865_v7 = vadd.f32 %v864_v6, %v841_v5  ;;  %v2903_v5 = vld [vmem:[#allocation7 + $0x134] sm:$0xf] }
 0x3f7   :  { %v2764_v6 = vld [vmem:[#allocation7 + $0x170] sm:$0xf0] }
 0x3f8   :  { %2711 = vmatmul.msk.f32.vlgmr.msra.gmra.mxu1 %vm95_vm1, %v865_v7 }
 0x3f9   :  { %1167 = vmatpush.bf16.msra.mxu1 %v2743_v42  ;;  %v3201_v42 = vor.u32 %v946_v41, %v945_v40 }
 0x3fb   :  { %v954_v53 = vperm.slane %v3201_v42, 0  ;;  %v959_v28 = vperm.slane %v3201_v42, 5 }
 0x475   :  { %v901_v9 = vpop.f32.mrf.mxu1 }
 0x476   :  { %v902_v10 = vadd.f32 %v901_v9, %v869_v8  ;;  %v2912_v8 = vld [vmem:[#allocation7 + $0x174] sm:$0xf0]  ;;  %v2904_v9 = vld [vmem:[#allocation7 + $0x13c] sm:$0xf] }
 0x478   :  { %v904_v11 = vadd.f32 %v902_v10, %v865_v7  ;;  %v2770_v7 = vld [vmem:[#allocation7 + $0x138] sm:$0xf]  ;;  %v2772_v10 = vld [vmem:[#allocation7 + $0x178] sm:$0xf0] }
 0x47a   :  { %v905_v12 = vsel %vm95_vm1, %v904_v11, 0.0 }
 0x47b   :  { %906 = vadd.xlane.f32.xlu2 %v905_v12  ;;  %v2767_v12 = vor.u32 %v2903_v5, %v2764_v6  ;;  %v2828_v5 = vld [vmem:[#allocation7 + $0x1e0] sm:$0xf0] }
 0x4ee   :  { %v907_v13 = vpop.xlane.xlu2 %906 }
 0x4ef   :  { %v908_v14 = vmul.f32 %v907_v13, %v3134_v22  ;;  %v2771_v13 = vor.u32 %v2912_v8, %v2770_v7 }
 0x4f1   :  { %v909_v15 = vsub.f32 %v904_v11, %v908_v14  ;;  %v2763_v11 = vor.u32 %v2911_v4, %v2762_v2  ;;  %v2775_v14 = vor.u32 %v2904_v9, %v2772_v10  ;;  %v2925_v2 = vld [vmem:[#allocation7 + $0x1dc] sm:$0xf0]  ;;  %v2917_v4 = vld [vmem:[#allocation7 + $0x1a4] sm:$0xf] }
 0x4f3   :  { %v910_v16 = vmul.f32 %v909_v15, %v909_v15 }
 0x4f5   :  { %v911_v17 = vsel %vm95_vm1, %v910_v16, 0.0  ;;  %v2921_v16 = vld [vmem:[#allocation7 + $0x1bc] sm:$0xf0] }
 0x4f6   :  { %912 = vadd.xlane.f32.xlu2 %v911_v17  ;;  %v2913_v17 = vld [vmem:[#allocation7 + $0x184] sm:$0xf] }
 0x4f7   :  { %v2799_v20 = vor.u32 %v2913_v17, %v2796_v18  ;;  %v961_v17 = vperm.slane %v3201_v42, 7 }
 0x569   :  { %v913_v43 = vpop.xlane.xlu2 %912 }
 0x56a   :  { %v914_v44 = vmul.f32 %v913_v43, %v3134_v22  ;;  %v956_v43 = vperm.slane %v3201_v42, 2 }
 0x56c   :  { %v915_v45 = vadd.f32 1e-05, %v914_v44  ;;  %v957_v44 = vperm.slane %v3201_v42, 3 }
 0x56e   :  { %2944 = vrsqrt.f32 %v915_v45  ;;  %vm922_vm11 = vweird.f32 %v915_v45 }
 0x574   :  { %v2945_v46 = vpop.eup %2944 }
 0x575   :  { %v917_v47 = vmul.f32 %v2945_v46, %v915_v45  ;;  %vm923_vm10 = vweird.f32 %v2945_v46 }
 0x576   :  { %vm924_vm12 = vmor %vm922_vm11, %vm923_vm10 }
 0x577   :  { %v918_v48 = vmul.f32 %v2945_v46, %v917_v47  ;;  %v2834_v47 = vld [vmem:[#allocation7 + $0x1a8] sm:$0xf] }
 0x579   :  { %v919_v49 = vmul.f32 0.5, %v918_v48 }
 0x57b   :  { %v920_v3 = vsub.f32 1.5, %v919_v49 }
 0x57d   :  { %v921_v50 = vmul.f32 %v2945_v46, %v920_v3  ;;  %v2926_v3 = vld [vmem:[#allocation7 + $0x1e4] sm:$0xf0] }
 0x57e   :  { %v2835_v51 = vor.u32 %v2926_v3, %v2834_v47 }
 0x57f   :  { %v925_v54 = vsel %vm924_vm12, %v2945_v46, %v921_v50  ;;  %v2918_v50 = vld [vmem:[#allocation7 + $0x1ac] sm:$0xf] }
 0x580   :  { %v3181_v57 = vmul.f32 %v925_v54, %v909_v15  ;;  %v2794_v15 = vld [vmem:[#allocation7 + $0x180] sm:$0xf]  ;;  %v955_v54 = vperm.slane %v3201_v42, 1  ;;  %v2839_v58 = vor.u32 %v2918_v50, %v2836_v52 }
 0x581   :  { %v2795_v19 = vor.u32 %v2921_v16, %v2794_v15  ;;  %v960_v16 = vperm.slane %v3201_v42, 6 }
 0x582   :  { %v927_v61 = vpack.c.bf16 %v3181_v57, %v3181_v57 }
 0x584   :  { %2776 = vmatmul.msk.bf16.vlgmr.msra.gmra.mxu2 %vm95_vm1, %v927_v61  ;;  %2777 = vmatmul.msk.bf16.vlgmr.msra.gmra.mxu3 %vm95_vm1, %v927_v61 }
 0x585   :  { %2778 = vmatmul.msk.bf16.vlgmr.msrb.gmra.mxu0 %vm95_vm1, %v927_v61  ;;  %2779 = vmatmul.msk.bf16.vlgmr.msrb.gmra.mxu1 %vm95_vm1, %v927_v61 }
 0x586   :  { %1180 = vmatpush.bf16.msra.mxu2 %v2747_v62  ;;  %1193 = vmatpush.bf16.msra.mxu3 %v2751_v63  ;;  %v2826_v63 = vld [vmem:[#allocation7 + $0x1a0] sm:$0xf] }
 0x587   :  { %1206 = vmatpush.bf16.msrb.mxu0 %v2755_v0  ;;  %1219 = vmatpush.bf16.msrb.mxu1 %v2759_v1  ;;  %v2827_v10 = vor.u32 %v2925_v2, %v2826_v63 }
 0x594   :  { %2780 = vmatmul.msk.bf16.vlgmr.msrb.gmra.mxu2 %vm95_vm1, %v927_v61  ;;  %2781 = vmatmul.msk.bf16.vlgmr.msrb.gmra.mxu3 %vm95_vm1, %v927_v61 }
 0x595   :  { %2782 = vmatmul.msk.bf16.vlgmr.msra.gmra.mxu0 %vm95_vm1, %v927_v61  ;;  %2783 = vmatmul.msk.bf16.vlgmr.msra.gmra.mxu1 %vm95_vm1, %v927_v61 }
 0x596   :  { %1232 = vmatpush.bf16.msrb.mxu2 %v2763_v11  ;;  %1245 = vmatpush.bf16.msrb.mxu3 %v2767_v12  ;;  %v2831_v11 = vor.u32 %v2917_v4, %v2828_v5 }
 0x597   :  { %1258 = vmatpush.bf16.msra.mxu0 %v2771_v13  ;;  %1271 = vmatpush.bf16.msra.mxu1 %v2775_v14 }
 0x5a4   :  { %2784 = vmatmul.msk.bf16.vlgmr.msra.gmra.mxu2 %vm95_vm1, %v927_v61  ;;  %2785 = vmatmul.msk.bf16.vlgmr.msra.gmra.mxu3 %vm95_vm1, %v927_v61 }
 0x5a5   :  { %2786 = vmatmul.msk.bf16.vlgmr.msrb.gmra.mxu0 %vm95_vm1, %v927_v61  ;;  %2787 = vmatmul.msk.bf16.vlgmr.msrb.gmra.mxu1 %vm95_vm1, %v927_v61 }
 0x5a6   :  { %1413 = vmatpush.bf16.xpose.msra.mxu2 %v2795_v19  ;;  %1426 = vmatpush.bf16.xpose.msra.mxu3 %v2799_v20  ;;  %v2850_v20 = vld [vmem:[#allocation7 + $0x1b8] sm:$0xf] }
 0x5a7   :  { %1439 = vmatpush.bf16.xpose.msrb.mxu0 %v2803_v25  ;;  %1452 = vmatpush.bf16.xpose.msrb.mxu1 %v2807_v27  ;;  %v2920_v25 = vld [vmem:[#allocation7 + $0x1bc] sm:$0xf]  ;;  %v958_v27 = vperm.slane %v3201_v42, 4  ;;  %v2851_v32 = vor.u32 %v2928_v24, %v2850_v20 }
 0x5b4   :  { %2788 = vmatmul.msk.bf16.vlgmr.msrb.gmra.mxu2 %vm95_vm1, %v927_v61  ;;  %2789 = vmatmul.msk.bf16.vlgmr.msrb.gmra.mxu3 %vm95_vm1, %v927_v61 }
 0x5b5   :  { %2790 = vmatmul.msk.bf16.vlgmr.msra.gmra.mxu0 %vm95_vm1, %v927_v61  ;;  %2791 = vmatmul.msk.bf16.vlgmr.msra.gmra.mxu1 %vm95_vm1, %v927_v61 }
 0x5b6   :  { %1465 = vmatpush.bf16.xpose.msrb.mxu2 %v2811_v30  ;;  %1478 = vmatpush.bf16.xpose.msrb.mxu3 %v2815_v33  ;;  %v2855_v33 = vor.u32 %v2920_v25, %v2852_v26 }
 0x5b7   :  { %1491 = vmatpush.bf16.xpose.msra.mxu0 %v2819_v37  ;;  %1504 = vmatpush.bf16.xpose.msra.mxu1 %v2823_v39  ;;  %v2842_v39 = vld [vmem:[#allocation7 + $0x1b0] sm:$0xf] }
 0x602   :  { %v1104_v45 = vpop.f32.mrf.mxu0  ;;  %v1117_v46 = vpop.f32.mrf.mxu1 }
 0x603   :  { %v1105_v48 = vadd.f32 %v1104_v45, %v956_v43  ;;  %v1118_v49 = vadd.f32 %v1117_v46, %v957_v44  ;;  %v2927_v43 = vld [vmem:[#allocation7 + $0x1ec] sm:$0xf0]  ;;  %v2919_v44 = vld [vmem:[#allocation7 + $0x1b4] sm:$0xf] }
 0x604   :  { %v2844_v45 = vld [vmem:[#allocation7 + $0x1f0] sm:$0xf0]  ;;  %v2843_v3 = vor.u32 %v2927_v43, %v2842_v39 }
 0x605   :  { %v1279_v55 = vmax.f32 %v1105_v48, 0.0  ;;  %v1280_v56 = vmax.f32 %v1118_v49, 0.0  ;;  %v951_v49 = vor.u32 %v950_v38, %v949_v31  ;;  %v2847_v50 = vor.u32 %v2919_v44, %v2844_v45 }
 0x607   :  { %v1295_v59 = vpack.c.bf16 %v1279_v55, %v1279_v55  ;;  %v1296_v60 = vpack.c.bf16 %v1280_v56, %v1280_v56  ;;  %v1078_v61 = vpop.f32.mrf.mxu2  ;;  %v1091_v62 = vpop.f32.mrf.mxu3  ;;  %v964_v56 = vperm.slane %v951_v49, 2  ;;  %v963_v63 = vperm.slane %v951_v49, 1 }
 0x608   :  { %v1079_v0 = vadd.f32 %v1078_v61, %v954_v53  ;;  %v1092_v1 = vadd.f32 %v1091_v62, %v955_v54  ;;  %v962_v62 = vperm.slane %v951_v49, 0  ;;  %v966_v24 = vperm.slane %v951_v49, 4 }
 0x609   :  { %1440 = vmatmul.bf16.vlgmr.msrb.gmra.mxu0 %v1295_v59  ;;  %1453 = vmatmul.bf16.vlgmr.msrb.gmra.mxu1 %v1296_v60  ;;  %v967_v25 = vperm.slane %v951_v49, 5 }
 0x60a   :  { %v1277_v6 = vmax.f32 %v1079_v0, 0.0  ;;  %v1278_v7 = vmax.f32 %v1092_v1, 0.0  ;;  %v1106_v8 = vpop.f32.mrf.mxu0  ;;  %v1119_v9 = vpop.f32.mrf.mxu1  ;;  %1543 = vmatpush.bf16.xpose.msrb.mxu0 %v2835_v51  ;;  %1556 = vmatpush.bf16.xpose.msrb.mxu1 %v2839_v58  ;;  %v965_v51 = vperm.slane %v951_v49, 3 }
 0x60c   :  { %v1293_v12 = vpack.c.bf16 %v1277_v6, %v1277_v6  ;;  %v1294_v13 = vpack.c.bf16 %v1278_v7, %v1278_v7 }
 0x60e   :  { %1414 = vmatmul.bf16.vlgmr.msra.gmra.mxu2 %v1293_v12  ;;  %1427 = vmatmul.bf16.vlgmr.msra.gmra.mxu3 %v1294_v13 }
 0x60f   :  { %v1080_v14 = vpop.f32.mrf.mxu2  ;;  %v1093_v15 = vpop.f32.mrf.mxu3  ;;  %1517 = vmatpush.bf16.xpose.msra.mxu2 %v2827_v10  ;;  %1530 = vmatpush.bf16.xpose.msra.mxu3 %v2831_v11 }
 0x612   :  { %v1156_v18 = vpop.f32.mrf.mxu0  ;;  %v1169_v19 = vpop.f32.mrf.mxu1 }
 0x613   :  { %v1157_v21 = vadd.f32 %v1156_v18, %v960_v16  ;;  %v1170_v23 = vadd.f32 %v1169_v19, %v961_v17  ;;  %v968_v17 = vperm.slane %v951_v49, 6  ;;  %v969_v18 = vperm.slane %v951_v49, 7 }
 0x615   :  { %v1283_v29 = vmax.f32 %v1157_v21, 0.0  ;;  %v1284_v30 = vmax.f32 %v1170_v23, 0.0 }
 0x617   :  { %v1299_v34 = vpack.c.bf16 %v1283_v29, %v1283_v29  ;;  %v1300_v35 = vpack.c.bf16 %v1284_v30, %v1284_v30  ;;  %v1130_v36 = vpop.f32.mrf.mxu2  ;;  %v1143_v37 = vpop.f32.mrf.mxu3 }
 0x618   :  { %v1131_v40 = vadd.f32 %v1130_v36, %v958_v27  ;;  %v1144_v41 = vadd.f32 %v1143_v37, %v959_v28 }
 0x619   :  { %1492 = vmatmul.bf16.vlgmr.msra.gmra.mxu0 %v1299_v34  ;;  %1505 = vmatmul.bf16.vlgmr.msra.gmra.mxu1 %v1300_v35 }
 0x61a   :  { %v1281_v46 = vmax.f32 %v1131_v40, 0.0  ;;  %v1282_v42 = vmax.f32 %v1144_v41, 0.0  ;;  %v1158_v47 = vpop.f32.mrf.mxu0  ;;  %v1171_v48 = vpop.f32.mrf.mxu1  ;;  %1595 = vmatpush.bf16.xpose.msra.mxu0 %v2851_v32  ;;  %1608 = vmatpush.bf16.xpose.msra.mxu1 %v2855_v33 }
 0x61b   :  { %v1325_v48 = vld [vmem:[#allocation4 + $0x78] ss:$0 sm:$0xff] }
 0x61c   :  { %v1297_v52 = vpack.c.bf16 %v1281_v46, %v1281_v46  ;;  %v1298_v53 = vpack.c.bf16 %v1282_v42, %v1282_v42 }
 0x61e   :  { %1466 = vmatmul.bf16.vlgmr.msrb.gmra.mxu2 %v1297_v52  ;;  %1479 = vmatmul.bf16.vlgmr.msrb.gmra.mxu3 %v1298_v53 }
 0x61f   :  { %v1132_v54 = vpop.f32.mrf.mxu2  ;;  %v1145_v55 = vpop.f32.mrf.mxu3  ;;  %1569 = vmatpush.bf16.xpose.msrb.mxu2 %v2843_v3  ;;  %1582 = vmatpush.bf16.xpose.msrb.mxu3 %v2847_v50 }
 0x622   :  { %v1208_v58 = vpop.f32.mrf.mxu0  ;;  %v1221_v59 = vpop.f32.mrf.mxu1 }
 0x623   :  { %v1209_v60 = vadd.f32 %v1208_v58, %v964_v56  ;;  %v1222_v61 = vadd.f32 %v1221_v59, %v965_v51 }
 0x625   :  { %v1287_v0 = vmax.f32 %v1209_v60, 0.0  ;;  %v1288_v1 = vmax.f32 %v1222_v61, 0.0 }
 0x627   :  { %v1303_v2 = vpack.c.bf16 %v1287_v0, %v1287_v0  ;;  %v1304_v4 = vpack.c.bf16 %v1288_v1, %v1288_v1  ;;  %v1182_v5 = vpop.f32.mrf.mxu2  ;;  %v1195_v6 = vpop.f32.mrf.mxu3 }
 0x628   :  { %v1183_v7 = vadd.f32 %v1182_v5, %v962_v62  ;;  %v1196_v8 = vadd.f32 %v1195_v6, %v963_v63 }
 0x629   :  { %1544 = vmatmul.bf16.vlgmr.msrb.gmra.mxu0 %v1303_v2  ;;  %1557 = vmatmul.bf16.vlgmr.msrb.gmra.mxu1 %v1304_v4 }
 0x62a   :  { %v1285_v9 = vmax.f32 %v1183_v7, 0.0  ;;  %v1286_v10 = vmax.f32 %v1196_v8, 0.0  ;;  %v1210_v11 = vpop.f32.mrf.mxu0  ;;  %v1223_v12 = vpop.f32.mrf.mxu1 }
 0x62c   :  { %v1301_v13 = vpack.c.bf16 %v1285_v9, %v1285_v9  ;;  %v1302_v14 = vpack.c.bf16 %v1286_v10, %v1286_v10 }
 0x62e   :  { %1518 = vmatmul.bf16.vlgmr.msra.gmra.mxu2 %v1301_v13  ;;  %1531 = vmatmul.bf16.vlgmr.msra.gmra.mxu3 %v1302_v14 }
 0x62f   :  { %v1184_v15 = vpop.f32.mrf.mxu2  ;;  %v1197_v16 = vpop.f32.mrf.mxu3 }
 0x632   :  { %v1260_v19 = vpop.f32.mrf.mxu0  ;;  %v1273_v20 = vpop.f32.mrf.mxu1 }
 0x633   :  { %v1261_v21 = vadd.f32 %v1260_v19, %v968_v17  ;;  %v1274_v23 = vadd.f32 %v1273_v20, %v969_v18 }
 0x635   :  { %v1291_v26 = vmax.f32 %v1261_v21, 0.0  ;;  %v1292_v27 = vmax.f32 %v1274_v23, 0.0  ;;  %v1614_v23 = vld [vmem:[#allocation4 + $0x79] ss:$0 sm:$0xff] }
 0x637   :  { %v1307_v28 = vpack.c.bf16 %v1291_v26, %v1291_v26  ;;  %v1308_v29 = vpack.c.bf16 %v1292_v27, %v1292_v27  ;;  %v1234_v30 = vpop.f32.mrf.mxu2  ;;  %v1247_v31 = vpop.f32.mrf.mxu3  ;;  %v1615_v26 = vmul.f32 %v1614_v23, %v3181_v57  ;;  %v1616_v27 = vld [vmem:[#allocation4 + $0x7a] ss:$0 sm:$0xff]  ;;  %v1651_v57 = vld [vmem:[#allocation4 + $0xa8] sm:$0x1f] }
 0x638   :  { %v1235_v32 = vadd.f32 %v1234_v30, %v966_v24  ;;  %v1248_v33 = vadd.f32 %v1247_v31, %v967_v25 }
 0x639   :  { %1596 = vmatmul.bf16.vlgmr.msra.gmra.mxu0 %v1307_v28  ;;  %1609 = vmatmul.bf16.vlgmr.msra.gmra.mxu1 %v1308_v29  ;;  %v1617_v30 = vadd.f32 %v1616_v27, %v1615_v26  ;;  %v1841_v26 = vld [vmem:[#allocation4 + $0x1f8] sm:$0xff] }
 0x63a   :  { %v1289_v34 = vmax.f32 %v1235_v32, 0.0  ;;  %v1290_v35 = vmax.f32 %v1248_v33, 0.0  ;;  %v1262_v36 = vpop.f32.mrf.mxu0  ;;  %v1275_v37 = vpop.f32.mrf.mxu1 }
 0x63c   :  { %v1305_v38 = vpack.c.bf16 %v1289_v34, %v1289_v34  ;;  %v1306_v39 = vpack.c.bf16 %v1290_v35, %v1290_v35 }
 0x63e   :  { %1570 = vmatmul.bf16.vlgmr.msrb.gmra.mxu2 %v1305_v38  ;;  %1583 = vmatmul.bf16.vlgmr.msrb.gmra.mxu3 %v1306_v39 }
 0x63f   :  { %v1236_v40 = vpop.f32.mrf.mxu2  ;;  %v1249_v41 = vpop.f32.mrf.mxu3 }
 0x640   :  { %v1648_v40 = vld [vmem:[#allocation4 + $0x90] sm:$0xff] }
 0x641   :  { %v1674_v41 = vrot.slane %v1648_v40, 5 }
 0x686   :  { %v1441_v43 = vpop.f32.mrf.mxu0  ;;  %v1454_v44 = vpop.f32.mrf.mxu1 }
 0x68e   :  { %v1443_v45 = vpop.f32.mrf.mxu0  ;;  %v1456_v46 = vpop.f32.mrf.mxu1 }
 0x691   :  { %v1415_v42 = vpop.f32.mrf.mxu2  ;;  %v1428_v47 = vpop.f32.mrf.mxu3 }
 0x692   :  { %v1416_v50 = vadd.f32 %v1415_v42, %v1325_v48  ;;  %v1652_v48 = vld [vmem:[#allocation4 + $0xb0] sm:$0x1f] }
 0x694   :  { %v1429_v54 = vadd.f32 %v1428_v47, %v1416_v50  ;;  %v1649_v47 = vld [vmem:[#allocation4 + $0x98] sm:$0xff]  ;;  %v1684_v50 = vrot.slane %v1652_v48, 5 }
 0x696   :  { %v1493_v49 = vpop.f32.mrf.mxu0  ;;  %v1506_v3 = vpop.f32.mrf.mxu1  ;;  %v1442_v51 = vadd.f32 %v1441_v43, %v1429_v54  ;;  %v1682_v43 = vrot.slane %v1651_v57, 5 }
 0x698   :  { %v1455_v60 = vadd.f32 %v1454_v44, %v1442_v51  ;;  %v1645_v44 = vld [vmem:[#allocation4 + $0x78] sm:$0xe0]  ;;  %v1683_v45 = vsel %vm1672_vm13, %v1674_v41, %v1682_v43 }
 0x699   :  { %v1417_v52 = vpop.f32.mrf.mxu2  ;;  %v1430_v53 = vpop.f32.mrf.mxu3  ;;  %v1673_v46 = vrot.slane %v1645_v44, 5  ;;  %1711 = vmatpush.msrb.mxu0 %v1683_v45  ;;  %v1835_v45 = vld [vmem:[#allocation4 + $0x1c8] sm:$0xff] }
 0x69b   :  { %v1675_v42 = vsel %vm1672_vm13, %v1673_v46, %v1674_v41  ;;  %v1836_v46 = vld [vmem:[#allocation4 + $0x1d0] sm:$0xff] }
 0x69c   :  { %1712 = vmatpush.msrb.mxu0 %v1675_v42  ;;  %v1837_v42 = vld [vmem:[#allocation4 + $0x1d8] sm:$0xff] }
 0x69e   :  { %v1495_v55 = vpop.f32.mrf.mxu0  ;;  %v1508_v56 = vpop.f32.mrf.mxu1 }
 0x6a1   :  { %v1467_v58 = vpop.f32.mrf.mxu2  ;;  %v1480_v59 = vpop.f32.mrf.mxu3 }
 0x6a2   :  { %v1468_v61 = vadd.f32 %v1467_v58, %v1455_v60 }
 0x6a4   :  { %v1481_v2 = vadd.f32 %v1480_v59, %v1468_v61 }
 0x6a6   :  { %v1545_v62 = vpop.f32.mrf.mxu0  ;;  %v1558_v63 = vpop.f32.mrf.mxu1  ;;  %v1494_v4 = vadd.f32 %v1493_v49, %v1481_v2  ;;  %v1646_v49 = vld [vmem:[#allocation4 + $0x80] sm:$0xe0]  ;;  %v1619_v2 = vld [vmem:[#allocation4 + $0x7b] ss:$0 sm:$0xff] }
 0x6a7   :  { %v1676_v52 = vrot.slane %v1646_v49, 5  ;;  %v1980_v49 = vrot.slane %v1835_v45, 6 }
 0x6a8   :  { %v1507_v9 = vadd.f32 %v1506_v3, %v1494_v4  ;;  %v1677_v3 = vrot.slane %v1649_v47, 5 }
 0x6a9   :  { %v1469_v0 = vpop.f32.mrf.mxu2  ;;  %v1482_v1 = vpop.f32.mrf.mxu3 }
 0x6aa   :  { %v1685_v54 = vsel %vm1672_vm13, %v1677_v3, %v1684_v50  ;;  %v1678_v55 = vsel %vm1672_vm13, %v1676_v52, %v1677_v3  ;;  %v1650_v0 = vld [vmem:[#allocation4 + $0xa0] sm:$0xff]  ;;  %v1653_v1 = vld [vmem:[#allocation4 + $0xb8] sm:$0x1f]  ;;  %v1982_v3 = vrot.slane %v1836_v46, 6  ;;  %v1984_v52 = vrot.slane %v1837_v42, 6  ;;  %v1815_v42 = vld [vmem:[#allocation4 + $0x128] sm:$0xff] }
 0x6ab   :  { %1731 = vmatpush.msra.mxu0 %v1685_v54  ;;  %v1833_v54 = vld [vmem:[#allocation4 + $0x1b8] sm:$0xff]  ;;  %v1814_v46 = vld [vmem:[#allocation4 + $0x120] sm:$0xff] }
 0x6ad   :  { %1732 = vmatpush.msra.mxu0 %v1678_v55  ;;  %v1834_v55 = vld [vmem:[#allocation4 + $0x1c0] sm:$0xff] }
 0x6ae   :  { %v1547_v5 = vpop.f32.mrf.mxu0  ;;  %v1560_v6 = vpop.f32.mrf.mxu1 }
 0x6af   :  { %v1647_v5 = vld [vmem:[#allocation4 + $0x88] sm:$0xe0] }
 0x6b1   :  { %v1519_v7 = vpop.f32.mrf.mxu2  ;;  %v1532_v8 = vpop.f32.mrf.mxu3 }
 0x6b2   :  { %v1520_v10 = vadd.f32 %v1519_v7, %v1507_v9  ;;  %v1686_v7 = vrot.slane %v1653_v1, 5 }
 0x6b4   :  { %v1533_v13 = vadd.f32 %v1532_v8, %v1520_v10  ;;  %v1620_v8 = vld [vmem:[#allocation4 + $0x7c] ss:$0 sm:$0xff]  ;;  %v1679_v10 = vrot.slane %v1647_v5, 5 }
 0x6b6   :  { %v1597_v11 = vpop.f32.mrf.mxu0  ;;  %v1610_v12 = vpop.f32.mrf.mxu1  ;;  %v1546_v16 = vadd.f32 %v1545_v62, %v1533_v13 }
 0x6b8   :  { %v1559_v19 = vadd.f32 %v1558_v63, %v1546_v16  ;;  %v1845_v16 = vld [vmem:[#allocation4 + $0x218] sm:$0xff] }
 0x6b9   :  { %v1521_v14 = vpop.f32.mrf.mxu2  ;;  %v1534_v15 = vpop.f32.mrf.mxu3 }
 0x6ba   :  { %v1844_v14 = vld [vmem:[#allocation4 + $0x210] sm:$0xff]  ;;  %v1847_v15 = vld [vmem:[#allocation4 + $0x228] sm:$0x3f] }
 0x6be   :  { %v1599_v17 = vpop.f32.mrf.mxu0  ;;  %v1612_v18 = vpop.f32.mrf.mxu1 }
 0x6bf   :  { %v1998_v17 = vrot.slane %v1844_v14, 6  ;;  %v2004_v18 = vrot.slane %v1847_v15, 6 }
 0x6c1   :  { %v1571_v20 = vpop.f32.mrf.mxu2  ;;  %v1584_v21 = vpop.f32.mrf.mxu3  ;;  %v2005_v27 = vsel %vm1910_vm2, %v1998_v17, %v2004_v18  ;;  %v1825_v18 = vld [vmem:[#allocation4 + $0x178] sm:$0xff] }
 0x6c2   :  { %v1572_v24 = vadd.f32 %v1571_v20, %v1559_v19  ;;  %v1848_v19 = vld [vmem:[#allocation4 + $0x230] sm:$0x3f]  ;;  %v2000_v20 = vrot.slane %v1845_v16, 6  ;;  %2058 = vmatpush.msrb.mxu1 %v2005_v27  ;;  %v1823_v16 = vld [vmem:[#allocation4 + $0x168] sm:$0xff]  ;;  %v1821_v27 = vld [vmem:[#allocation4 + $0x158] sm:$0xff] }
 0x6c3   :  { %v2006_v23 = vrot.slane %v1848_v19, 6 }
 0x6c4   :  { %v1585_v25 = vadd.f32 %v1584_v21, %v1572_v24  ;;  %v1846_v21 = vld [vmem:[#allocation4 + $0x220] sm:$0xff]  ;;  %v1849_v24 = vld [vmem:[#allocation4 + $0x238] sm:$0x3f] }
 0x6c6   :  { %v1598_v28 = vadd.f32 %v1597_v11, %v1585_v25  ;;  %v2002_v25 = vrot.slane %v1846_v21, 6  ;;  %v1956_v21 = vrot.slane %v1823_v16, 6  ;;  %v1803_v16 = vld [vmem:[#allocation4 + $0xc8] sm:$0xff] }
 0x6c8   :  { %v1611_v29 = vadd.f32 %v1610_v12, %v1598_v28  ;;  %v2008_v28 = vrot.slane %v1849_v24, 6 }
 0x6c9   :  { %v1573_v31 = vpop.f32.mrf.mxu2  ;;  %v1586_v32 = vpop.f32.mrf.mxu3 }
 0x6ca   :  { %v1618_v33 = vadd.f32 %v1617_v30, %v1611_v29  ;;  %v1992_v29 = vrot.slane %v1841_v26, 6  ;;  %v1842_v30 = vld [vmem:[#allocation4 + $0x200] sm:$0xff]  ;;  %v1843_v31 = vld [vmem:[#allocation4 + $0x208] sm:$0xff]  ;;  %v2007_v32 = vsel %vm1910_vm2, %v2000_v20, %v2006_v23  ;;  %v1820_v26 = vld [vmem:[#allocation4 + $0x150] sm:$0xff] }
 0x6cb   :  { %2078 = vmatpush.msra.mxu2 %v2007_v32  ;;  %v1950_v32 = vrot.slane %v1820_v26, 6 }
 0x6cc   :  { %v1621_v34 = vsel %vm95_vm1, %v1618_v33, 0.0 }
 0x6cd   :  { %1622 = vadd.xlane.f32.xlu0 %v1621_v34  ;;  %v1996_v34 = vrot.slane %v1843_v31, 6 }
 0x6cf   :  { %v2003_v43 = vsel %vm1910_vm2, %v1996_v34, %v2002_v25 }
 0x740   :  { %v1623_v35 = vpop.xlane.xlu0 %1622 }
 0x741   :  { %v1624_v36 = vmul.f32 %v1623_v35, %v3134_v22  ;;  %v1838_v35 = vld [vmem:[#allocation4 + $0x1e0] sm:$0xff] }
 0x742   :  { %v1986_v40 = vrot.slane %v1838_v35, 6 }
 0x743   :  { %v1625_v37 = vsub.f32 %v1618_v33, %v1624_v36  ;;  %v1994_v33 = vrot.slane %v1842_v30, 6  ;;  %v1839_v36 = vld [vmem:[#allocation4 + $0x1e8] sm:$0xff] }
 0x744   :  { %v1988_v57 = vrot.slane %v1839_v36, 6  ;;  %v1993_v47 = vsel %vm1910_vm2, %v1986_v40, %v1992_v29  ;;  %v1817_v36 = vld [vmem:[#allocation4 + $0x138] sm:$0xff] }
 0x745   :  { %v1626_v38 = vmul.f32 %v1625_v37, %v1625_v37  ;;  %v2001_v41 = vsel %vm1910_vm2, %v1994_v33, %v2000_v20 }
 0x746   :  { %2079 = vmatpush.msra.mxu2 %v2001_v41  ;;  %v1995_v48 = vsel %vm1910_vm2, %v1988_v57, %v1994_v33  ;;  %v1952_v33 = vrot.slane %v1821_v27, 6 }
 0x747   :  { %v1627_v39 = vsel %vm95_vm1, %v1626_v38, 0.0  ;;  %v2009_v38 = vsel %vm1910_vm2, %v2002_v25, %v2008_v28  ;;  %v1960_v25 = vrot.slane %v1825_v18, 6  ;;  %v1822_v28 = vld [vmem:[#allocation4 + $0x160] sm:$0xff] }
 0x748   :  { %1628 = vadd.xlane.f32.xlu1 %v1627_v39  ;;  %v1999_v39 = vsel %vm1910_vm2, %v1992_v29, %v1998_v17  ;;  %2098 = vmatpush.msra.mxu3 %v2009_v38  ;;  %v1824_v17 = vld [vmem:[#allocation4 + $0x170] sm:$0xff]  ;;  %v1954_v35 = vrot.slane %v1822_v28, 6  ;;  %v1819_v38 = vld [vmem:[#allocation4 + $0x148] sm:$0xff] }
 0x749   :  { %2059 = vmatpush.msrb.mxu1 %v1999_v39  ;;  %2080 = vmatpush.msra.mxu2 %v1995_v48  ;;  %v1958_v23 = vrot.slane %v1824_v17, 6  ;;  %v3246_v29 = vld [vmem:[#allocation4 + $0xad] ss:$8 sm:$0x7]  ;;  %v1957_v39 = vsel %vm1910_vm2, %v1950_v32, %v1956_v21  ;;  %v1948_v45 = vrot.slane %v1819_v38, 6 }
 0x74a   :  { %2099 = vmatpush.msra.mxu3 %v2003_v43  ;;  %v1657_v43 = vperm.slane %v3246_v29, 0  ;;  %v1804_v17 = vld [vmem:[#allocation4 + $0xd0] sm:$0xff] }
 0x74b   :  { %2060 = vmatpush.msrb.mxu1 %v1993_v47  ;;  %v1816_v47 = vld [vmem:[#allocation4 + $0x130] sm:$0xff] }
 0x74c   :  { %v1800_v28 = vld [vmem:[#allocation4 + $0xb0] sm:$0xc0] }
 0x7bb   :  { %v1629_v53 = vpop.xlane.xlu1 %1628 }
 0x7bc   :  { %v1630_v56 = vmul.f32 %v1629_v53, %v3134_v22  ;;  %v1680_v22 = vrot.slane %v1650_v0, 5  ;;  %v1832_v53 = vld [vmem:[#allocation4 + $0x1b0] sm:$0xff]  ;;  %v1831_v0 = vld [vmem:[#allocation4 + $0x1a8] sm:$0xff] }
 0x7be   :  { %v1631_v51 = vadd.f32 1e-05, %v1630_v56  ;;  %v1687_v12 = vsel %vm1672_vm13, %v1680_v22, %v1686_v7  ;;  %v1681_v13 = vsel %vm1672_vm13, %v1679_v10, %v1680_v22  ;;  %v1987_v56 = vsel %vm1910_vm2, %v1980_v49, %v1986_v40  ;;  %v1826_v7 = vld [vmem:[#allocation4 + $0x180] sm:$0xff] }
 0x7bf   :  { %2061 = vmatpush.msrb.mxu1 %v1987_v56  ;;  %v1972_v22 = vrot.slane %v1831_v0, 6  ;;  %v1959_v40 = vsel %vm1910_vm2, %v1952_v33, %v1958_v23  ;;  %v1813_v56 = vld [vmem:[#allocation4 + $0x118] sm:$0xff] }
 0x7c0   :  { %2946 = vrsqrt.f32 %v1631_v51  ;;  %vm1638_vm15 = vweird.f32 %v1631_v51  ;;  %v1936_v0 = vrot.slane %v1813_v56, 6 }
 0x7c6   :  { %v2947_v58 = vpop.eup %2946 }
 0x7c7   :  { %v1633_v59 = vmul.f32 %v2947_v58, %v1631_v51  ;;  %vm1639_vm14 = vweird.f32 %v2947_v58  ;;  %v1989_v51 = vsel %vm1910_vm2, %v1982_v3, %v1988_v57  ;;  %v1944_v57 = vrot.slane %v1817_v36, 6 }
 0x7c8   :  { %vm1640_vm0 = vmor %vm1638_vm15, %vm1639_vm14  ;;  %2081 = vmatpush.msra.mxu2 %v1989_v51 }
 0x7c9   :  { %v1634_v60 = vmul.f32 %v2947_v58, %v1633_v59  ;;  %v1976_v59 = vrot.slane %v1833_v54, 6  ;;  %v1951_v48 = vsel %vm1910_vm2, %v1944_v57, %v1950_v32  ;;  %v1811_v54 = vld [vmem:[#allocation4 + $0x108] sm:$0xff] }
 0x7cb   :  { %v1635_v61 = vmul.f32 0.5, %v1634_v60 }
 0x7cd   :  { %v1636_v62 = vsub.f32 1.5, %v1635_v61  ;;  %v1978_v61 = vrot.slane %v1834_v55, 6  ;;  %v1812_v55 = vld [vmem:[#allocation4 + $0x110] sm:$0xff] }
 0x7cf   :  { %v1637_v63 = vmul.f32 %v2947_v58, %v1636_v62  ;;  %v1829_v62 = vld [vmem:[#allocation4 + $0x198] sm:$0xff]  ;;  %v1979_v14 = vsel %vm1910_vm2, %v1972_v22, %v1978_v61 }
 0x7d1   :  { %v1641_v4 = vsel %vm1640_vm0, %v2947_v58, %v1637_v63  ;;  %v1974_v58 = vrot.slane %v1832_v53, 6  ;;  %v1830_v63 = vld [vmem:[#allocation4 + $0x1a0] sm:$0xff]  ;;  %v1942_v53 = vrot.slane %v1816_v47, 6 }
 0x7d2   :  { %v1642_v6 = vmul.f32 %v1641_v4, %v1625_v37  ;;  %v1840_v37 = vld [vmem:[#allocation4 + $0x1f0] sm:$0xff]  ;;  %v1968_v4 = vrot.slane %v1829_v62, 6  ;;  %v1970_v5 = vrot.slane %v1830_v63, 6  ;;  %v1658_v62 = vperm.slane %v3246_v29, 1 }
 0x7d3   :  { %v1990_v44 = vrot.slane %v1840_v37, 6  ;;  %v1981_v1 = vsel %vm1910_vm2, %v1974_v58, %v1980_v49  ;;  %v1818_v37 = vld [vmem:[#allocation4 + $0x140] sm:$0xff]  ;;  %v1949_v63 = vsel %vm1910_vm2, %v1942_v53, %v1948_v45 }
 0x7d4   :  { %v1643_v9 = vmul.f32 %v1642_v6, %v1619_v2  ;;  %v1983_v2 = vsel %vm1910_vm2, %v1976_v59, %v1982_v3  ;;  %2062 = vmatpush.msrb.mxu1 %v1981_v1  ;;  %v1985_v6 = vsel %vm1910_vm2, %v1978_v61, %v1984_v52  ;;  %v1975_v10 = vsel %vm1910_vm2, %v1968_v4, %v1974_v58  ;;  %v1808_v1 = vld [vmem:[#allocation4 + $0xf0] sm:$0xff] }
 0x7d5   :  { %v1997_v50 = vsel %vm1910_vm2, %v1990_v44, %v1996_v34  ;;  %v1991_v60 = vsel %vm1910_vm2, %v1984_v52, %v1990_v44  ;;  %2082 = vmatpush.msra.mxu2 %v1983_v2  ;;  %v1946_v41 = vrot.slane %v1818_v37, 6  ;;  %v1961_v44 = vsel %vm1910_vm2, %v1954_v35, %v1960_v25  ;;  %v1809_v2 = vld [vmem:[#allocation4 + $0xf8] sm:$0xff] }
 0x7d6   :  { %v1644_v11 = vadd.f32 %v1643_v9, %v1620_v8  ;;  %2100 = vmatpush.msra.mxu3 %v1997_v50  ;;  %v1827_v8 = vld [vmem:[#allocation4 + $0x188] sm:$0xff]  ;;  %v1828_v9 = vld [vmem:[#allocation4 + $0x190] sm:$0xff]  ;;  %2063 = vmatpush.msrb.mxu1 %v1975_v10  ;;  %v1938_v3 = vrot.slane %v1814_v46, 6  ;;  %v1940_v50 = vrot.slane %v1815_v42, 6  ;;  %v1955_v52 = vsel %vm1910_vm2, %v1948_v45, %v1954_v35 }
 0x7d7   :  { %v1966_v15 = vrot.slane %v1828_v9, 6  ;;  %v1953_v49 = vsel %vm1910_vm2, %v1946_v41, %v1952_v33  ;;  %v1806_v9 = vld [vmem:[#allocation4 + $0xe0] sm:$0xff]  ;;  %v1807_v10 = vld [vmem:[#allocation4 + $0xe8] sm:$0xff]  ;;  %v1915_v33 = vrot.slane %v1803_v16, 6  ;;  %v1918_v35 = vrot.slane %v1804_v17, 6 }
 0x7d8   :  { %2856 = vmatmul.msk.f32.vlgmr.msrb.gmra.mxu0 %vm95_vm1, %v1644_v11  ;;  %2101 = vmatpush.msra.mxu3 %v1991_v60  ;;  %v1945_v51 = vsel %vm1910_vm2, %v1938_v3, %v1944_v57  ;;  %v1947_v58 = vsel %vm1910_vm2, %v1940_v50, %v1946_v41  ;;  %v1934_v60 = vrot.slane %v1812_v55, 6  ;;  %v1914_v37 = vrot.slane %v1800_v28, 6  ;;  %v2209_v17 = vld [vmem:[#allocation4 + $0x3b0] sm:$0x7f] }
 0x7d9   :  { %1751 = vmatpush.msrb.mxu0 %v1687_v12  ;;  %v1962_v12 = vrot.slane %v1826_v7, 6  ;;  %v1973_v24 = vsel %vm1910_vm2, %v1966_v15, %v1972_v22  ;;  %v1967_v34 = vsel %vm1910_vm2, %v1960_v25, %v1966_v15  ;;  %v1926_v7 = vrot.slane %v1808_v1, 6  ;;  %v1802_v15 = vld [vmem:[#allocation4 + $0xc0] sm:$0xff] }
 0x7da   :  { %2102 = vmatpush.msra.mxu3 %v1985_v6  ;;  %v1941_v22 = vsel %vm1910_vm2, %v1934_v60, %v1940_v50  ;;  %v1912_v27 = vrot.slane %v1802_v15, 6 }
 0x7db   :  { %1752 = vmatpush.msrb.mxu0 %v1681_v13  ;;  %v1964_v13 = vrot.slane %v1827_v8, 6  ;;  %v1969_v19 = vsel %vm1910_vm2, %v1962_v12, %v1968_v4  ;;  %v1963_v30 = vsel %vm1910_vm2, %v1956_v21, %v1962_v12  ;;  %v1810_v4 = vld [vmem:[#allocation4 + $0x100] sm:$0xff]  ;;  %v1805_v8 = vld [vmem:[#allocation4 + $0xd8] sm:$0xff]  ;;  %v1928_v12 = vrot.slane %v1809_v2, 6 }
 0x7dc   :  { %2103 = vmatpush.msra.mxu3 %v1979_v14  ;;  %2064 = vmatpush.msrb.mxu1 %v1969_v19  ;;  %v1920_v14 = vrot.slane %v1805_v8, 6  ;;  %v1924_v21 = vrot.slane %v1807_v10, 6 }
 0x7dd   :  { %v1971_v20 = vsel %vm1910_vm2, %v1964_v13, %v1970_v5  ;;  %v1965_v31 = vsel %vm1910_vm2, %v1958_v23, %v1964_v13  ;;  %v1930_v13 = vrot.slane %v1810_v4, 6  ;;  %v1799_v23 = vld [vmem:[#allocation4 + $0xa8] sm:$0xc0] }
 0x7de   :  { %2104 = vmatpush.msra.mxu3 %v1973_v24  ;;  %2065 = vmatpush.msrb.mxu1 %v1963_v30  ;;  %v1935_v24 = vsel %vm1910_vm2, %v1928_v12, %v1934_v60  ;;  %v1927_v26 = vsel %vm1910_vm2, %v1920_v14, %v1926_v7  ;;  %v1801_v30 = vld [vmem:[#allocation4 + $0xb8] sm:$0xc0]  ;;  %v1911_v36 = vrot.slane %v1799_v23, 6  ;;  %v1925_v57 = vsel %vm1910_vm2, %v1918_v35, %v1924_v21 }
 0x7df   :  { %v1937_v25 = vsel %vm1910_vm2, %v1930_v13, %v1936_v0  ;;  %v1931_v32 = vsel %vm1910_vm2, %v1924_v21, %v1930_v13  ;;  %v2208_v13 = vld [vmem:[#allocation4 + $0x3a8] sm:$0x7f]  ;;  %v2210_v21 = vld [vmem:[#allocation4 + $0x3b8] sm:$0x7f] }
 0x7e0   :  { %2857 = vmatmul.msk.f32.vlgmr.msra.gmra.mxu0 %vm95_vm1, %v1644_v11  ;;  %2105 = vmatpush.msra.mxu3 %v1967_v34  ;;  %v1921_v34 = vsel %vm1910_vm2, %v1912_v27, %v1920_v14  ;;  %v1913_v41 = vsel %vm1910_vm2, %v1911_v36, %v1912_v27  ;;  %v2206_v14 = vld [vmem:[#allocation4 + $0x398] sm:$0xff]  ;;  %v2364_v16 = vrot.slane %v2208_v13, 7  ;;  %v2368_v27 = vrot.slane %v2210_v21, 7  ;;  %v2201_v36 = vld [vmem:[#allocation4 + $0x370] sm:$0xff] }
 0x7e1   :  { %2066 = vmatpush.msrb.mxu1 %v1957_v39  ;;  %v1917_v39 = vrot.slane %v1801_v30, 6 }
 0x7e2   :  { %2106 = vmatpush.msra.mxu3 %v1961_v44 }
 0x7e3   :  { %2067 = vmatpush.msrb.mxu1 %v1951_v48  ;;  %v1919_v45 = vsel %vm1910_vm2, %v1917_v39, %v1918_v35  ;;  %v1659_v48 = vperm.slane %v3246_v29, 2  ;;  %v2200_v35 = vld [vmem:[#allocation4 + $0x368] sm:$0xff] }
 0x7e4   :  { %2107 = vmatpush.msra.mxu3 %v1955_v52 }
 0x7e5   :  { %2068 = vmatpush.msrb.mxu1 %v1945_v51 }
 0x7e6   :  { %2108 = vmatpush.msra.mxu3 %v1949_v63 }
 0x7e8   :  { %2858 = vmatmul.msk.f32.vlgmr.msrb.gmra.mxu0 %vm95_vm1, %v1644_v11  ;;  %v1977_v11 = vsel %vm1910_vm2, %v1970_v5, %v1976_v59  ;;  %v1932_v59 = vrot.slane %v1811_v54, 6 }
 0x7e9   :  { %2083 = vmatpush.msra.mxu2 %v1977_v11  ;;  %v1943_v11 = vsel %vm1910_vm2, %v1936_v0, %v1942_v53 }
 0x7ea   :  { %v1939_v6 = vsel %vm1910_vm2, %v1932_v59, %v1938_v3  ;;  %v1933_v19 = vsel %vm1910_vm2, %v1926_v7, %v1932_v59  ;;  %2109 = vmatpush.msra.mxu3 %v1943_v11 }
 0x7eb   :  { %2084 = vmatpush.msra.mxu2 %v1971_v20  ;;  %2069 = vmatpush.msrb.mxu1 %v1939_v6  ;;  %v1922_v20 = vrot.slane %v1806_v9, 6 }
 0x7ec   :  { %2110 = vmatpush.msra.mxu3 %v1937_v25  ;;  %v2203_v25 = vld [vmem:[#allocation4 + $0x380] sm:$0xff] }
 0x7ed   :  { %2085 = vmatpush.msra.mxu2 %v1965_v31  ;;  %2070 = vmatpush.msrb.mxu1 %v1933_v19  ;;  %v1929_v31 = vsel %vm1910_vm2, %v1922_v20, %v1928_v12  ;;  %v1923_v38 = vsel %vm1910_vm2, %v1915_v33, %v1922_v20  ;;  %v2205_v12 = vld [vmem:[#allocation4 + $0x390] sm:$0xff]  ;;  %v2207_v19 = vld [vmem:[#allocation4 + $0x3a0] sm:$0xff]  ;;  %v2366_v20 = vrot.slane %v2209_v17, 7  ;;  %v2354_v30 = vrot.slane %v2203_v25, 7  ;;  %v2182_v25 = vld [vmem:[#allocation4 + $0x2d8] sm:$0xff] }
 0x7ee   :  { %2111 = vmatpush.msra.mxu3 %v1931_v32  ;;  %v2358_v15 = vrot.slane %v2205_v12, 7  ;;  %v2362_v23 = vrot.slane %v2207_v19, 7 }
 0x7ef   :  { %2086 = vmatpush.msra.mxu2 %v1959_v40  ;;  %2071 = vmatpush.msrb.mxu1 %v1927_v26 }
 0x7f0   :  { %2112 = vmatpush.msra.mxu3 %v1925_v57  ;;  %v2365_v26 = vsel %vm873_vm6, %v2358_v15, %v2364_v16  ;;  %v2186_v16 = vld [vmem:[#allocation4 + $0x2f8] sm:$0xff] }
 0x7f1   :  { %2087 = vmatpush.msra.mxu2 %v1953_v49  ;;  %2072 = vmatpush.msrb.mxu1 %v1921_v34  ;;  %v2199_v34 = vld [vmem:[#allocation4 + $0x360] sm:$0xff] }
 0x7f2   :  { %2113 = vmatpush.msra.mxu3 %v1919_v45  ;;  %2418 = vmatpush.msra.mxu0 %v2365_v26  ;;  %v2197_v45 = vld [vmem:[#allocation4 + $0x350] sm:$0xff]  ;;  %v2183_v26 = vld [vmem:[#allocation4 + $0x2e0] sm:$0xff] }
 0x7f3   :  { %2088 = vmatpush.msra.mxu2 %v1947_v58  ;;  %2073 = vmatpush.msrb.mxu1 %v1913_v41  ;;  %v2348_v41 = vrot.slane %v2200_v35, 7  ;;  %v2178_v35 = vld [vmem:[#allocation4 + $0x2b8] sm:$0xff] }
 0x7f5   :  { %2089 = vmatpush.msra.mxu2 %v1941_v22 }
 0x7f7   :  { %2090 = vmatpush.msra.mxu2 %v1935_v24  ;;  %v2202_v24 = vld [vmem:[#allocation4 + $0x378] sm:$0xff] }
 0x7f8   :  { %v2352_v28 = vrot.slane %v2202_v24, 7  ;;  %v2181_v24 = vld [vmem:[#allocation4 + $0x2d0] sm:$0xff] }
 0x7f9   :  { %2091 = vmatpush.msra.mxu2 %v1929_v31  ;;  %v2204_v31 = vld [vmem:[#allocation4 + $0x388] sm:$0xff] }
 0x7fb   :  { %2092 = vmatpush.msra.mxu2 %v1923_v38  ;;  %v2359_v38 = vsel %vm873_vm6, %v2352_v28, %v2358_v15  ;;  %v2185_v15 = vld [vmem:[#allocation4 + $0x2f0] sm:$0xff] }
 0x7fc   :  { %2419 = vmatpush.msra.mxu0 %v2359_v38  ;;  %v2318_v19 = vrot.slane %v2185_v15, 7 }
 0x855   :  { %v1714_v61 = vpop.f32.mrf.mxu0 }
 0x856   :  { %v1715_v5 = vadd.f32 %v1714_v61, %v1657_v43  ;;  %v1916_v43 = vsel %vm1910_vm2, %v1914_v37, %v1915_v33  ;;  %v2356_v33 = vrot.slane %v2204_v31, 7  ;;  %v2369_v37 = vsel %vm873_vm6, %v2362_v23, %v2368_v27  ;;  %v3299_v27 = vld [vmem:[#allocation4 + $0x22e] ss:$8 sm:$0x7] }
 0x857   :  { %2093 = vmatpush.msra.mxu2 %v1916_v43  ;;  %v2350_v43 = vrot.slane %v2201_v36, 7  ;;  %v2179_v36 = vld [vmem:[#allocation4 + $0x2c0] sm:$0xff] }
 0x858   :  { %v2859_v18 = vmul.f32 -1.442695, %v1715_v5  ;;  %v2363_v57 = vsel %vm873_vm6, %v2356_v33, %v2362_v23 }
 0x859   :  { %2458 = vmatpush.msrb.mxu2 %v2369_v37  ;;  %v2180_v37 = vld [vmem:[#allocation4 + $0x2c8] sm:$0xff] }
 0x85a   :  { %2948 = vpow2.f32 %v2859_v18  ;;  %v2360_v18 = vrot.slane %v2206_v14, 7  ;;  %v2184_v14 = vld [vmem:[#allocation4 + $0x2e8] sm:$0xff] }
 0x85b   :  { %2459 = vmatpush.msrb.mxu2 %v2363_v57  ;;  %v2308_v57 = vrot.slane %v2180_v37, 7 }
 0x85c   :  { %v2367_v32 = vsel %vm873_vm6, %v2360_v18, %v2366_v20  ;;  %v2361_v39 = vsel %vm873_vm6, %v2354_v30, %v2360_v18  ;;  %v2316_v18 = vrot.slane %v2184_v14, 7  ;;  %v2320_v20 = vrot.slane %v2186_v16, 7  ;;  %v2164_v14 = vld [vmem:[#allocation4 + $0x248] sm:$0xff] }
 0x85d   :  { %v1734_v40 = vpop.f32.mrf.mxu0  ;;  %2438 = vmatpush.msra.mxu1 %v2367_v32  ;;  %v2310_v32 = vrot.slane %v2181_v24, 7 }
 0x85e   :  { %v1735_v44 = vadd.f32 %v1734_v40, %v1658_v62  ;;  %v2346_v40 = vrot.slane %v2199_v34, 7  ;;  %v2314_v34 = vrot.slane %v2183_v26, 7  ;;  %v2161_v26 = vld [vmem:[#allocation4 + $0x230] sm:$0x80] }
 0x85f   :  { %2439 = vmatpush.msra.mxu1 %v2361_v39  ;;  %v2317_v38 = vsel %vm873_vm6, %v2310_v32, %v2316_v18  ;;  %v2304_v39 = vrot.slane %v2178_v35, 7  ;;  %v2274_v37 = vrot.slane %v2161_v26, 7 }
 0x860   :  { %v2949_v46 = vpop.eup %2948  ;;  %v2860_v42 = vmul.f32 -1.442695, %v1735_v44  ;;  %v2196_v44 = vld [vmem:[#allocation4 + $0x348] sm:$0xff] }
 0x861   :  { %v1763_v47 = vadd.f32 1.0, %v2949_v46  ;;  %v2198_v46 = vld [vmem:[#allocation4 + $0x358] sm:$0xff] }
 0x862   :  { %2950 = vpow2.f32 %v2860_v42  ;;  %v2353_v42 = vsel %vm873_vm6, %v2346_v40, %v2352_v28 }
 0x863   :  { %2952 = vrcp.f32 %v1763_v47  ;;  %v1776_v56 = vand.u32 2147483648, %v1763_v47  ;;  %v1774_v58 = vand.u32 2147483647, %v1763_v47  ;;  %vm1770_vm3 = vweird.f32 %v1763_v47  ;;  %2420 = vmatpush.msra.mxu0 %v2353_v42  ;;  %v2177_v42 = vld [vmem:[#allocation4 + $0x2b0] sm:$0xff] }
 0x865   :  { %v1754_v49 = vpop.f32.mrf.mxu0  ;;  %v1777_v61 = vor.u32 1.1754944e-38, %v1776_v56  ;;  %vm1775_vm5 = vcmp.eq.f32.partialorder %v1774_v58, 8.507059e+37 }
 0x866   :  { %v1755_v53 = vadd.f32 %v1754_v49, %v1659_v48  ;;  %v2342_v48 = vrot.slane %v2197_v45, 7  ;;  %v2344_v49 = vrot.slane %v2198_v46, 7  ;;  %v2175_v45 = vld [vmem:[#allocation4 + $0x2a0] sm:$0xff]  ;;  %v2176_v46 = vld [vmem:[#allocation4 + $0x2a8] sm:$0xff] }
 0x868   :  { %v2951_v3 = vpop.eup %2950  ;;  %v2349_v56 = vsel %vm873_vm6, %v2342_v48, %v2348_v41 }
 0x869   :  { %v2953_v50 = vpop.eup %2952  ;;  %v1764_v52 = vadd.f32 1.0, %v2951_v3  ;;  %v2355_v3 = vsel %vm873_vm6, %v2348_v41, %v2354_v30  ;;  %v1853_v41 = vperm.slane %v3299_v27, 0 }
 0x86a   :  { %v1766_v54 = vmul.f32 %v2953_v50, %v1763_v47  ;;  %vm1771_vm1 = vweird.f32 %v2953_v50  ;;  %v2340_v47 = vrot.slane %v2196_v44, 7  ;;  %2440 = vmatpush.msra.mxu1 %v2355_v3  ;;  %v2321_v44 = vsel %vm873_vm6, %v2314_v34, %v2320_v20 }
 0x86b   :  { %2954 = vrcp.f32 %v1764_v52  ;;  %vm1772_vm4 = vmor %vm1770_vm3, %vm1771_vm1  ;;  %v1791_v4 = vand.u32 2147483648, %v1764_v52  ;;  %v1789_v6 = vand.u32 2147483647, %v1764_v52  ;;  %vm1785_vm8 = vweird.f32 %v1764_v52 }
 0x86c   :  { %v1767_v55 = vsub.f32 1.0, %v1766_v54  ;;  %2956 = vtanh.f32 %v1755_v53  ;;  %v2194_v53 = vld [vmem:[#allocation4 + $0x338] sm:$0xff]  ;;  %v2195_v54 = vld [vmem:[#allocation4 + $0x340] sm:$0xff]  ;;  %2441 = vmatpush.msra.mxu1 %v2349_v56  ;;  %v2298_v3 = vrot.slane %v2175_v45, 7 }
 0x86d   :  { %v1792_v7 = vor.u32 1.1754944e-38, %v1791_v4  ;;  %vm1790_vm10 = vcmp.eq.f32.partialorder %v1789_v6, 8.507059e+37  ;;  %v2187_v6 = vld [vmem:[#allocation4 + $0x300] sm:$0xff] }
 0x86e   :  { %v1768_v51 = vmul.f32 %v2953_v50, %v1767_v55  ;;  %v2347_v55 = vsel %vm873_vm6, %v2340_v47, %v2346_v40  ;;  %v2306_v40 = vrot.slane %v2179_v36, 7  ;;  %v2305_v56 = vsel %vm873_vm6, %v2298_v3, %v2304_v39 }
 0x86f   :  { %2421 = vmatpush.msra.mxu0 %v2347_v55  ;;  %v2174_v55 = vld [vmem:[#allocation4 + $0x298] sm:$0xff] }
 0x870   :  { %v1769_v59 = vadd.f32 %v2953_v50, %v1768_v51  ;;  %v2351_v51 = vsel %vm873_vm6, %v2344_v49, %v2350_v43 }
 0x871   :  { %v2955_v60 = vpop.eup %2954 }
 0x872   :  { %v1781_v62 = vmul.f32 %v2955_v60, %v1764_v52  ;;  %v1773_v29 = vsel %vm1772_vm4, %v2953_v50, %v1769_v59  ;;  %v2957_v63 = vpop.eup %2956  ;;  %vm1786_vm7 = vweird.f32 %v2955_v60  ;;  %v2357_v50 = vsel %vm873_vm6, %v2350_v43, %v2356_v33  ;;  %v2193_v52 = vld [vmem:[#allocation4 + $0x330] sm:$0xff] }
 0x873   :  { %v1778_v0 = vsel %vm1775_vm5, %v1777_v61, %v1773_v29  ;;  %vm1787_vm9 = vmor %vm1785_vm8, %vm1786_vm7  ;;  %v2334_v58 = vrot.slane %v2193_v52, 7  ;;  %2460 = vmatpush.msrb.mxu2 %v2357_v50  ;;  %v2336_v59 = vrot.slane %v2194_v53, 7  ;;  %v2190_v61 = vld [vmem:[#allocation4 + $0x318] sm:$0xff]  ;;  %v2192_v29 = vld [vmem:[#allocation4 + $0x328] sm:$0xff]  ;;  %v2312_v33 = vrot.slane %v2182_v25, 7 }
 0x874   :  { %v1782_v1 = vsub.f32 1.0, %v1781_v62  ;;  %v1796_v2 = vmul.f32 %v2957_v63, %v1778_v0  ;;  %v2191_v62 = vld [vmem:[#allocation4 + $0x320] sm:$0xff]  ;;  %v2328_v0 = vrot.slane %v2190_v61, 7  ;;  %v2300_v50 = vrot.slane %v2176_v46, 7  ;;  %v2172_v53 = vld [vmem:[#allocation4 + $0x288] sm:$0xff] }
 0x875   :  { %v2341_v63 = vsel %vm873_vm6, %v2334_v58, %v2340_v47  ;;  %2461 = vmatpush.msrb.mxu2 %v2351_v51  ;;  %v2343_v4 = vsel %vm873_vm6, %v2336_v59, %v2342_v48  ;;  %v2319_v43 = vsel %vm873_vm6, %v2312_v33, %v2318_v19  ;;  %v2311_v47 = vsel %vm873_vm6, %v2304_v39, %v2310_v32  ;;  %v2160_v25 = vld [vmem:[#allocation4 + $0x228] sm:$0x80] }
 0x876   :  { %v1783_v5 = vmul.f32 %v2955_v60, %v1782_v1  ;;  %2958 = vtanh.f32 %v1796_v2  ;;  %v2330_v1 = vrot.slane %v2191_v62, 7  ;;  %v2332_v2 = vrot.slane %v2192_v29, 7  ;;  %2422 = vmatpush.msra.mxu0 %v2341_v63  ;;  %2442 = vmatpush.msra.mxu1 %v2343_v4  ;;  %v2169_v63 = vld [vmem:[#allocation4 + $0x270] sm:$0xff] }
 0x877   :  { %v2313_v48 = vsel %vm873_vm6, %v2306_v40, %v2312_v33  ;;  %v2302_v52 = vrot.slane %v2177_v42, 7  ;;  %v2292_v51 = vrot.slane %v2172_v53, 7  ;;  %v1854_v61 = vperm.slane %v3299_v27, 1 }
 0x878   :  { %v1784_v22 = vadd.f32 %v2955_v60, %v1783_v5  ;;  %v2307_v62 = vsel %vm873_vm6, %v2300_v50, %v2306_v40  ;;  %v2271_v36 = vrot.slane %v2160_v25, 7 }
 0x879   :  { %v2309_v29 = vsel %vm873_vm6, %v2302_v52, %v2308_v57  ;;  %v2299_v4 = vsel %vm873_vm6, %v2292_v51, %v2298_v3 }
 0x87a   :  { %v1788_v8 = vsel %vm1787_vm9, %v2955_v60, %v1784_v22  ;;  %v2338_v60 = vrot.slane %v2195_v54, 7  ;;  %v2188_v22 = vld [vmem:[#allocation4 + $0x308] sm:$0xff]  ;;  %v2173_v54 = vld [vmem:[#allocation4 + $0x290] sm:$0xff] }
 0x87b   :  { %v1793_v9 = vsel %vm1790_vm10, %v1792_v7, %v1788_v8  ;;  %v2189_v7 = vld [vmem:[#allocation4 + $0x310] sm:$0xff]  ;;  %v2335_v8 = vsel %vm873_vm6, %v2328_v0, %v2334_v58  ;;  %v2324_v12 = vrot.slane %v2188_v22, 7  ;;  %v2294_v58 = vrot.slane %v2173_v54, 7  ;;  %v2166_v22 = vld [vmem:[#allocation4 + $0x258] sm:$0xff] }
 0x87c   :  { %v2959_v10 = vpop.eup %2958  ;;  %v2345_v5 = vsel %vm873_vm6, %v2338_v60, %v2344_v49  ;;  %2423 = vmatpush.msra.mxu0 %v2335_v8  ;;  %v2326_v13 = vrot.slane %v2189_v7, 7  ;;  %v2315_v49 = vsel %vm873_vm6, %v2308_v57, %v2314_v34  ;;  %v2167_v7 = vld [vmem:[#allocation4 + $0x260] sm:$0xff]  ;;  %v2168_v8 = vld [vmem:[#allocation4 + $0x268] sm:$0xff]  ;;  %v2275_v34 = vrot.slane %v2164_v14, 7 }
 0x87d   :  { %v1798_v11 = vmul.f32 %v2959_v10, %v1793_v9  ;;  %v2337_v9 = vsel %vm873_vm6, %v2330_v1, %v2336_v59  ;;  %v2339_v10 = vsel %vm873_vm6, %v2332_v2, %v2338_v60  ;;  %2462 = vmatpush.msrb.mxu2 %v2345_v5  ;;  %v2331_v21 = vsel %vm873_vm6, %v2324_v12, %v2330_v1  ;;  %v2171_v1 = vld [vmem:[#allocation4 + $0x280] sm:$0xff]  ;;  %v2531_v14 = vld [vmem:[#allocation4 + $0x4c8] sm:$0xff] }
 0x87e   :  { %2443 = vmatpush.msra.mxu1 %v2337_v9  ;;  %v2333_v23 = vsel %vm873_vm6, %v2326_v13, %v2332_v2  ;;  %v2325_v30 = vsel %vm873_vm6, %v2318_v19, %v2324_v12  ;;  %v2327_v31 = vsel %vm873_vm6, %v2320_v20, %v2326_v13  ;;  %v2296_v59 = vrot.slane %v2174_v55, 7  ;;  %v2163_v13 = vld [vmem:[#allocation4 + $0x240] sm:$0xff]  ;;  %v2165_v19 = vld [vmem:[#allocation4 + $0x250] sm:$0xff] }
 0x87f   :  { %2074 = vmatmul.f32.vlgmr.msrb.gmra.mxu1 %v1798_v11  ;;  %2094 = vmatmul.f32.vlgmr.msra.gmra.mxu2 %v1798_v11  ;;  %v2301_v5 = vsel %vm873_vm6, %v2294_v58, %v2300_v50  ;;  %v2286_v9 = vrot.slane %v2169_v63, 7  ;;  %v2280_v12 = vrot.slane %v2166_v22, 7  ;;  %v2282_v16 = vrot.slane %v2167_v7, 7 }
 0x880   :  { %2114 = vmatmul.f32.vlgmr.msra.gmra.mxu3 %v1798_v11  ;;  %v2322_v11 = vrot.slane %v2187_v6, 7  ;;  %2463 = vmatpush.msrb.mxu2 %v2339_v10  ;;  %v2303_v6 = vsel %vm873_vm6, %v2296_v59, %v2302_v52  ;;  %v2278_v35 = vrot.slane %v2165_v19, 7  ;;  %v2527_v19 = vld [vmem:[#allocation4 + $0x468] sm:$0xff] }
 0x881   :  { %2444 = vmatpush.msra.mxu1 %v2331_v21  ;;  %v2293_v20 = vsel %vm873_vm6, %v2286_v9, %v2292_v51  ;;  %v2287_v24 = vsel %vm873_vm6, %v2280_v12, %v2286_v9  ;;  %v2283_v40 = vsel %vm873_vm6, %v2275_v34, %v2282_v16 }
 0x882   :  { %v2329_v17 = vsel %vm873_vm6, %v2322_v11, %v2328_v0  ;;  %v2323_v28 = vsel %vm873_vm6, %v2316_v18, %v2322_v11  ;;  %2464 = vmatpush.msrb.mxu2 %v2333_v23  ;;  %v2170_v0 = vld [vmem:[#allocation4 + $0x278] sm:$0xff]  ;;  %v2290_v11 = vrot.slane %v2171_v1, 7  ;;  %v2272_v18 = vrot.slane %v2163_v13, 7  ;;  %v2532_v13 = vld [vmem:[#allocation4 + $0x4e0] sm:$0xff] }
 0x883   :  { %2424 = vmatpush.msra.mxu0 %v2329_v17  ;;  %2445 = vmatpush.msra.mxu1 %v2325_v30  ;;  %v2288_v10 = vrot.slane %v2170_v0, 7  ;;  %v2284_v17 = vrot.slane %v2168_v8, 7 }
 0x884   :  { %2465 = vmatpush.msrb.mxu2 %v2327_v31  ;;  %v2297_v23 = vsel %vm873_vm6, %v2290_v11, %v2296_v59  ;;  %v2281_v32 = vsel %vm873_vm6, %v2272_v18, %v2280_v12  ;;  %v2533_v12 = vld [vmem:[#allocation4 + $0x4f8] sm:$0xff] }
 0x885   :  { %2425 = vmatpush.msra.mxu0 %v2323_v28  ;;  %2446 = vmatpush.msra.mxu1 %v2319_v43  ;;  %v2295_v21 = vsel %vm873_vm6, %v2288_v10, %v2294_v58  ;;  %v2162_v28 = vld [vmem:[#allocation4 + $0x238] sm:$0x80]  ;;  %v2289_v30 = vsel %vm873_vm6, %v2282_v16, %v2288_v10  ;;  %v2291_v31 = vsel %vm873_vm6, %v2284_v17, %v2290_v11  ;;  %v2535_v10 = vld [vmem:[#allocation4 + $0x528] sm:$0xff]  ;;  %v2534_v11 = vld [vmem:[#allocation4 + $0x510] sm:$0xff] }
 0x886   :  { %2466 = vmatpush.msrb.mxu2 %v2321_v44  ;;  %v2277_v39 = vrot.slane %v2162_v28, 7  ;;  %v2285_v57 = vsel %vm873_vm6, %v2278_v35, %v2284_v17  ;;  %v2276_v44 = vsel %vm873_vm6, %v2274_v37, %v2275_v34  ;;  %2537 = vmatpush.msrb.mxu3 %v2535_v10  ;;  %v2529_v16 = vld [vmem:[#allocation4 + $0x498] sm:$0xff]  ;;  %v2528_v17 = vld [vmem:[#allocation4 + $0x480] sm:$0xff] }
 0x887   :  { %2426 = vmatpush.msra.mxu0 %v2317_v38  ;;  %2447 = vmatpush.msra.mxu1 %v2313_v48  ;;  %v2520_v37 = vld [vmem:[#allocation4 + $0x3c0] sm:$0xff] }
 0x888   :  { %2467 = vmatpush.msrb.mxu2 %v2315_v49  ;;  %v2279_v45 = vsel %vm873_vm6, %v2277_v39, %v2278_v35  ;;  %2538 = vmatpush.msrb.mxu3 %v2534_v11  ;;  %v2522_v35 = vld [vmem:[#allocation4 + $0x3f0] sm:$0xff] }
 0x889   :  { %2427 = vmatpush.msra.mxu0 %v2311_v47  ;;  %2448 = vmatpush.msra.mxu1 %v2307_v62  ;;  %v1855_v47 = vperm.slane %v3299_v27, 2 }
 0x88a   :  { %2468 = vmatpush.msrb.mxu2 %v2309_v29  ;;  %2539 = vmatpush.msrb.mxu3 %v2533_v12 }
 0x88b   :  { %2428 = vmatpush.msra.mxu0 %v2305_v56  ;;  %2449 = vmatpush.msra.mxu1 %v2301_v5 }
 0x88c   :  { %2469 = vmatpush.msrb.mxu2 %v2303_v6  ;;  %2540 = vmatpush.msrb.mxu3 %v2532_v13 }
 0x88d   :  { %2429 = vmatpush.msra.mxu0 %v2299_v4  ;;  %2450 = vmatpush.msra.mxu1 %v2295_v21 }
 0x88e   :  { %2470 = vmatpush.msrb.mxu2 %v2297_v23  ;;  %2541 = vmatpush.msrb.mxu3 %v2531_v14  ;;  %v2526_v23 = vld [vmem:[#allocation4 + $0x450] sm:$0xff] }
 0x88f   :  { %2430 = vmatpush.msra.mxu0 %v2293_v20  ;;  %2451 = vmatpush.msra.mxu1 %v2289_v30 }
 0x890   :  { %2471 = vmatpush.msrb.mxu2 %v2291_v31  ;;  %v2524_v31 = vld [vmem:[#allocation4 + $0x420] sm:$0xff] }
 0x891   :  { %2431 = vmatpush.msra.mxu0 %v2287_v24  ;;  %2452 = vmatpush.msra.mxu1 %v2283_v40  ;;  %v2525_v24 = vld [vmem:[#allocation4 + $0x438] sm:$0xff] }
 0x892   :  { %2472 = vmatpush.msrb.mxu2 %v2285_v57 }
 0x893   :  { %2432 = vmatpush.msra.mxu0 %v2281_v32  ;;  %2453 = vmatpush.msra.mxu1 %v2276_v44  ;;  %v2523_v32 = vld [vmem:[#allocation4 + $0x408] sm:$0xff] }
 0x894   :  { %2473 = vmatpush.msrb.mxu2 %v2279_v45 }
 0x8fc   :  { %v2075_v60 = vpop.f32.mrf.mxu1 }
 0x8fd   :  { %v2076_v2 = vadd.f32 %v2075_v60, %v1853_v41  ;;  %v2273_v41 = vsel %vm873_vm6, %v2271_v36, %v2272_v18  ;;  %v2212_v18 = vld [vmem:[#allocation4 + $0x3af] ss:$8 sm:$0x7] }
 0x8fe   :  { %2433 = vmatpush.msra.mxu0 %v2273_v41  ;;  %v2214_v20 = vperm.slane %v2212_v18, 0  ;;  %v2215_v21 = vperm.slane %v2212_v18, 1  ;;  %v2521_v36 = vld [vmem:[#allocation4 + $0x3d8] sm:$0xff]  ;;  %v2216_v41 = vperm.slane %v2212_v18, 2 }
 0x8ff   :  { %v2861_v15 = vmul.f32 -1.442695, %v2076_v2 }
 0x901   :  { %2960 = vpow2.f32 %v2861_v15  ;;  %v2530_v15 = vld [vmem:[#allocation4 + $0x4b0] sm:$0xff] }
 0x902   :  { %v2095_v33 = vpop.f32.mrf.mxu2  ;;  %2542 = vmatpush.msrb.mxu3 %v2530_v15 }
 0x903   :  { %v2096_v38 = vadd.f32 %v2095_v33, %v1854_v61  ;;  %v2115_v49 = vpop.f32.mrf.mxu3 }
 0x904   :  { %v2116_v52 = vadd.f32 %v2115_v49, %v1855_v47  ;;  %2543 = vmatpush.msrb.mxu3 %v2529_v16 }
 0x905   :  { %v2862_v43 = vmul.f32 -1.442695, %v2096_v38 }
 0x906   :  { %2544 = vmatpush.msrb.mxu3 %v2528_v17 }
 0x907   :  { %v2961_v46 = vpop.eup %2960  ;;  %2962 = vpow2.f32 %v2862_v43 }
 0x908   :  { %v2124_v42 = vadd.f32 1.0, %v2961_v46  ;;  %2545 = vmatpush.msrb.mxu3 %v2527_v19 }
 0x90a   :  { %2964 = vrcp.f32 %v2124_v42  ;;  %v2137_v55 = vand.u32 2147483648, %v2124_v42  ;;  %v2135_v51 = vand.u32 2147483647, %v2124_v42  ;;  %vm2131_vm11 = vweird.f32 %v2124_v42  ;;  %2546 = vmatpush.msrb.mxu3 %v2526_v23 }
 0x90c   :  { %v2138_v61 = vor.u32 1.1754944e-38, %v2137_v55  ;;  %vm2136_vm13 = vcmp.eq.f32.partialorder %v2135_v51, 8.507059e+37  ;;  %2547 = vmatpush.msrb.mxu3 %v2525_v24 }
 0x90d   :  { %v2963_v48 = vpop.eup %2962 }
 0x90e   :  { %v2125_v3 = vadd.f32 1.0, %v2963_v48  ;;  %2548 = vmatpush.msrb.mxu3 %v2524_v31 }
 0x910   :  { %v2965_v50 = vpop.eup %2964  ;;  %2966 = vrcp.f32 %v2125_v3  ;;  %v2152_v2 = vand.u32 2147483648, %v2125_v3  ;;  %vm2146_vm15 = vweird.f32 %v2125_v3  ;;  %v2150_v5 = vand.u32 2147483647, %v2125_v3  ;;  %2549 = vmatpush.msrb.mxu3 %v2523_v32 }
 0x911   :  { %v2127_v53 = vmul.f32 %v2965_v50, %v2124_v42  ;;  %2968 = vtanh.f32 %v2116_v52  ;;  %vm2132_vm6 = vweird.f32 %v2965_v50 }
 0x912   :  { %vm2133_vm12 = vmor %vm2131_vm11, %vm2132_vm6  ;;  %v2153_v22 = vor.u32 1.1754944e-38, %v2152_v2  ;;  %vm2151_vm2 = vcmp.eq.f32.partialorder %v2150_v5, 8.507059e+37  ;;  %2550 = vmatpush.msrb.mxu3 %v2522_v35  ;;  %v2536_v2 = vld [vmem:[#allocation4 + $0x540] ss:$0 sm:$0xff] }
 0x913   :  { %v2128_v54 = vsub.f32 1.0, %v2127_v53 }
 0x914   :  { %2551 = vmatpush.msrb.mxu3 %v2521_v36 }
 0x915   :  { %v2129_v56 = vmul.f32 %v2965_v50, %v2128_v54 }
 0x916   :  { %v2967_v58 = vpop.eup %2966  ;;  %2552 = vmatpush.msrb.mxu3 %v2520_v37 }
 0x917   :  { %v2142_v59 = vmul.f32 %v2967_v58, %v2125_v3  ;;  %v2130_v60 = vadd.f32 %v2965_v50, %v2129_v56  ;;  %v2969_v29 = vpop.eup %2968  ;;  %vm2147_vm14 = vweird.f32 %v2967_v58 }
 0x918   :  { %vm2148_vm0 = vmor %vm2146_vm15, %vm2147_vm14 }
 0x919   :  { %v2143_v27 = vsub.f32 1.0, %v2142_v59  ;;  %v2134_v62 = vsel %vm2133_vm12, %v2965_v50, %v2130_v60 }
 0x91a   :  { %v2139_v63 = vsel %vm2136_vm13, %v2138_v61, %v2134_v62 }
 0x91b   :  { %v2144_v0 = vmul.f32 %v2967_v58, %v2143_v27  ;;  %v2157_v1 = vmul.f32 %v2969_v29, %v2139_v63 }
 0x91d   :  { %2970 = vtanh.f32 %v2157_v1  ;;  %v2145_v4 = vadd.f32 %v2967_v58, %v2144_v0 }
 0x91f   :  { %v2149_v6 = vsel %vm2148_vm0, %v2967_v58, %v2145_v4 }
 0x920   :  { %v2154_v8 = vsel %vm2151_vm2, %v2153_v22, %v2149_v6 }
 0x923   :  { %v2971_v7 = vpop.eup %2970 }
 0x924   :  { %v2159_v9 = vmul.f32 %v2971_v7, %v2154_v8 }
 0x926   :  { %2434 = vmatmul.f32.vlgmr.msra.gmra.mxu0 %v2159_v9  ;;  %2454 = vmatmul.f32.vlgmr.msra.gmra.mxu1 %v2159_v9 }
 0x927   :  { %2474 = vmatmul.f32.vlgmr.msrb.gmra.mxu2 %v2159_v9 }
 0x9a3   :  { %v2435_v25 = vpop.f32.mrf.mxu0  ;;  %v2455_v26 = vpop.f32.mrf.mxu1 }
 0x9a4   :  { %v2436_v28 = vadd.f32 %v2435_v25, %v2214_v20  ;;  %v2456_v30 = vadd.f32 %v2455_v26, %v2215_v21 }
 0x9a6   :  { %v2863_v33 = vmul.f32 -1.442695, %v2436_v28  ;;  %v2864_v34 = vmul.f32 -1.442695, %v2456_v30 }
 0x9a8   :  { %2972 = vpow2.f32 %v2863_v33 }
 0x9a9   :  { %2974 = vpow2.f32 %v2864_v34 }
 0x9aa   :  { %v2475_v43 = vpop.f32.mrf.mxu2 }
 0x9ab   :  { %v2476_v45 = vadd.f32 %v2475_v43, %v2216_v41 }
 0x9ae   :  { %v2973_v38 = vpop.eup %2972 }
 0x9af   :  { %v2975_v39 = vpop.eup %2974  ;;  %v2484_v40 = vadd.f32 1.0, %v2973_v38 }
 0x9b0   :  { %v2485_v57 = vadd.f32 1.0, %v2975_v39 }
 0x9b1   :  { %2976 = vrcp.f32 %v2484_v40  ;;  %v2497_v3 = vand.u32 2147483648, %v2484_v40  ;;  %v2495_v52 = vand.u32 2147483647, %v2484_v40  ;;  %vm2491_vm3 = vweird.f32 %v2484_v40 }
 0x9b2   :  { %2978 = vrcp.f32 %v2485_v57  ;;  %v2512_v61 = vand.u32 2147483648, %v2485_v57  ;;  %vm2506_vm8 = vweird.f32 %v2485_v57  ;;  %v2510_v27 = vand.u32 2147483647, %v2485_v57 }
 0x9b3   :  { %2980 = vtanh.f32 %v2476_v45  ;;  %v2498_v55 = vor.u32 1.1754944e-38, %v2497_v3  ;;  %vm2496_vm5 = vcmp.eq.f32.partialorder %v2495_v52, 8.507059e+37 }
 0x9b4   :  { %v2513_v29 = vor.u32 1.1754944e-38, %v2512_v61  ;;  %vm2511_vm10 = vcmp.eq.f32.partialorder %v2510_v27, 8.507059e+37 }
 0x9b7   :  { %v2977_v44 = vpop.eup %2976 }
 0x9b8   :  { %v2979_v46 = vpop.eup %2978  ;;  %v2487_v42 = vmul.f32 %v2977_v44, %v2484_v40  ;;  %vm2492_vm1 = vweird.f32 %v2977_v44 }
 0x9b9   :  { %v2502_v47 = vmul.f32 %v2979_v46, %v2485_v57  ;;  %vm2493_vm4 = vmor %vm2491_vm3, %vm2492_vm1  ;;  %v2981_v51 = vpop.eup %2980  ;;  %vm2507_vm7 = vweird.f32 %v2979_v46 }
 0x9ba   :  { %v2488_v48 = vsub.f32 1.0, %v2487_v42  ;;  %vm2508_vm9 = vmor %vm2506_vm8, %vm2507_vm7 }
 0x9bb   :  { %v2503_v49 = vsub.f32 1.0, %v2502_v47 }
 0x9bc   :  { %v2489_v50 = vmul.f32 %v2977_v44, %v2488_v48 }
 0x9bd   :  { %v2504_v54 = vmul.f32 %v2979_v46, %v2503_v49 }
 0x9be   :  { %v2490_v53 = vadd.f32 %v2977_v44, %v2489_v50 }
 0x9bf   :  { %v2505_v60 = vadd.f32 %v2979_v46, %v2504_v54 }
 0x9c0   :  { %v2494_v56 = vsel %vm2493_vm4, %v2977_v44, %v2490_v53 }
 0x9c1   :  { %v2499_v58 = vsel %vm2496_vm5, %v2498_v55, %v2494_v56  ;;  %v2509_v62 = vsel %vm2508_vm9, %v2979_v46, %v2505_v60 }
 0x9c2   :  { %v2517_v59 = vmul.f32 %v2981_v51, %v2499_v58  ;;  %v2514_v0 = vsel %vm2511_vm10, %v2513_v29, %v2509_v62 }
 0x9c4   :  { %2982 = vtanh.f32 %v2517_v59 }
 0x9ca   :  { %v2983_v63 = vpop.eup %2982 }
 0x9cb   :  { %v2519_v1 = vmul.f32 %v2983_v63, %v2514_v0 }
 0x9cd   :  { %2553 = vmatmul.f32.vlgmr.msrb.gmra.mxu3 %v2519_v1  ;;  %2557 = vst [vmem:[%s3341_s4] sm:$0xff] %v2519_v1 }
 0xa50   :  { %v2554_v4 = vpop.f32.mrf.mxu3 }
 0xa51   :  { %v2555_v5 = vadd.f32 %v2554_v4, %v2536_v2 }
 0xa53   :  { %2558 = vst [vmem:[%s3341_s4 + $0x8] sm:$0xff] %v2555_v5 }
 0xa54   :  { %2563 = vsyncpa [#allocation3], 1 }
 0xa55   :  { %2564 = vsyncpa [#allocation5], 1 }
 0xa56   :  { %2565 = vsyncpa [#allocation8], 1 }

</bundles_post_ra>
